<compile_context>
chip_gen: v7x
topology: tpu7x:2x2x1
jax: 0.10.0
libtpu: 0.0.40
codegen_flags: <defaults>
</compile_context>

<pallas_src>
import jax
import jax.numpy as jnp
from jax.experimental import pallas as pl
from jax.experimental.pallas import tpu as pltpu


LANE = 128
MIN_TILE = 8 * LANE  # 1024: smallest batch tile whose (tile/128, 128) slabs are full (8,128) vregs


def _round_up(n, m):
    return ((n + m - 1) // m) * m


def pima_mlp_kernel(x_ref, w1_ref, b1_ref, w2_ref, b2_ref, w3_ref, b3_ref, o_ref):
    """Fused 3-layer MLP on one batch tile.

    x_ref : (4, NBT, 128) VMEM -- four dense per-feature slabs (batch on sublane+lane)
    w*/b* : SMEM (PyTorch layout W:(out,in), b:(out,)) -- scalar reads -> sreg splats
    o_ref : (NBT, 128) VMEM -- dense output slab, full unmasked stores
    """
    xs = [x_ref[k] for k in range(4)]  # 4 dense (NBT, 128) slabs

    def dense(w_ref, b_ref, inputs, relu):
        n_out, n_in = w_ref.shape
        assert n_in == len(inputs)
        outs = []
        for j in range(n_out):                              # static unroll (<= 12)
            acc = inputs[0] * w_ref[j, 0] + b_ref[j]        # vector * scalar splat
            for k in range(1, n_in):
                acc = acc + inputs[k] * w_ref[j, k]
            outs.append(jnp.maximum(acc, 0.0) if relu else acc)
        return outs

    h1 = dense(w1_ref, b1_ref, xs, relu=True)      # 12 dense slabs
    h2 = dense(w2_ref, b2_ref, h1, relu=True)      # 8 dense slabs
    (z,) = dense(w3_ref, b3_ref, h2, relu=False)   # 1 dense slab (8 scalar MACs)
    o_ref[...] = jax.nn.sigmoid(z)                 # logistic on the EUP (idle slot)


def pima_classifier_forward(x, params, *, tile_b=8192):
    """x: (B, 4) float32.  params: PyTorch-layout W (out, in), b (out,)."""
    x = x.astype(jnp.float32)
    B, in_f = x.shape
    assert in_f == 4

    # Tile selection: multiple of 1024 (dense (8,128) vregs), no bigger than needed,
    # and >= 2 grid steps when B allows so both v7x TensorCores get work.
    tile_b = _round_up(max(MIN_TILE, min(tile_b, _round_up(B, MIN_TILE))), MIN_TILE)
    if B > MIN_TILE and pl.cdiv(B, tile_b) < 2:
        tile_b = _round_up(pl.cdiv(B, 2), MIN_TILE)
    n_tiles = pl.cdiv(B, tile_b)
    B_pad = n_tiles * tile_b
    nb_t = tile_b // LANE          # sublane-rows per tile (multiple of 8)
    NB = B_pad // LANE

    # Layout plumbing: one tiny transpose of the (B,4) input (16 B/row); the
    # (4,B)->(4,NB,128) reshape and the output (NB,128)->(B,1) reshape are free.
    xT = jnp.transpose(x)                                   # (4, B)
    if B_pad != B:
        xT = jnp.pad(xT, ((0, 0), (0, B_pad - B)))          # zero-pad tail tile
    x_slabs = xT.reshape(in_f, NB, LANE)

    w1, w2, w3 = params["w1"], params["w2"], params["w3"]
    b1, b2, b3 = params["b1"], params["b2"], params["b3"]

    smem = pl.BlockSpec(memory_space=pltpu.MemorySpace.SMEM)

    out = pl.pallas_call(
        pima_mlp_kernel,
        out_shape=jax.ShapeDtypeStruct((NB, LANE), jnp.float32),
        grid=(n_tiles,),
        in_specs=[
            pl.BlockSpec((in_f, nb_t, LANE), lambda i: (0, i, 0)),   # x batch tile
            smem, smem,                                              # w1, b1
            smem, smem,                                              # w2, b2
            smem, smem,                                              # w3, b3
        ],
        out_specs=pl.BlockSpec((nb_t, LANE), lambda i: (i, 0)),
        compiler_params=pltpu.CompilerParams(
            dimension_semantics=("parallel",)),                      # v7x: 2-TC shard
        cost_estimate=pl.CostEstimate(
            flops=int(B_pad) * 2 * (4 * 12 + 12 * 8 + 8 * 1),
            transcendentals=int(B_pad),
            bytes_accessed=int(B_pad) * (in_f + 1) * 4,
        ),
    )(x_slabs, w1, b1, w2, b2, w3, b3)

    return out.reshape(B_pad, 1)[:B]                         # free reshape + slice


def init_params(key):
    """PyTorch nn.Linear default init: uniform +/- 1/sqrt(fan_in), W:(out,in), b:(out,)."""
    def linear(key, fan_in, fan_out):
        kw, kb = jax.random.split(key)
        bound = 1.0 / jnp.sqrt(jnp.float32(fan_in))
        w = jax.random.uniform(kw, (fan_out, fan_in), jnp.float32, -bound, bound)
        b = jax.random.uniform(kb, (fan_out,), jnp.float32, -bound, bound)
        return w, b

    k1, k2, k3 = jax.random.split(key, 3)
    w1, b1 = linear(k1, 4, 12)
    w2, b2 = linear(k2, 12, 8)
    w3, b3 = linear(k3, 8, 1)
    return {"w1": w1, "b1": b1, "w2": w2, "b2": b2, "w3": w3, "b3": b3}


def reference_forward(x, p):
    h1 = jnp.maximum(x @ p["w1"].T + p["b1"], 0.0)
    h2 = jnp.maximum(h1 @ p["w2"].T + p["b2"], 0.0)
    return jax.nn.sigmoid(h2 @ p["w3"].T + p["b3"])


if __name__ == "__main__":
    key = jax.random.PRNGKey(0)
    kx, kp = jax.random.split(key)
    params = init_params(kp)

    # Small batch: exercises the padded single-tile path.
    x_small = jax.random.normal(kx, (8, 4), jnp.float32)
    out_small = jax.block_until_ready(pima_classifier_forward(x_small, params))
    ref_small = reference_forward(x_small, params)
    assert out_small.shape == (8, 1)
    assert jnp.allclose(out_small, ref_small, atol=1e-5, rtol=1e-5)

    # Larger batch: exercises the multi-tile grid, tail padding and the >=2-tile clamp.
    x_big = jax.random.normal(kx, (2500, 4), jnp.float32)
    out_big = jax.block_until_ready(pima_classifier_forward(x_big, params))
    ref_big = reference_forward(x_big, params)
    assert out_big.shape == (2500, 1)
    assert jnp.allclose(out_big, ref_big, atol=1e-5, rtol=1e-5)

    print("KERNEL_OK")
</pallas_src>

<mosaic_0001>
module attributes {stable_mosaic.version = 11 : i64} {
  func.func @pima_mlp_kernel(%arg0: i32, %arg1: memref<4x8x128xf32, #tpu.memory_space<vmem>>, %arg2: memref<12x4xf32, #tpu.memory_space<smem>>, %arg3: memref<12xf32, #tpu.memory_space<smem>>, %arg4: memref<8x12xf32, #tpu.memory_space<smem>>, %arg5: memref<8xf32, #tpu.memory_space<smem>>, %arg6: memref<1x8xf32, #tpu.memory_space<smem>>, %arg7: memref<1xf32, #tpu.memory_space<smem>>, %arg8: memref<8x128xf32, #tpu.memory_space<vmem>>) attributes {dimension_semantics = [#tpu.dimension_semantics<parallel>], iteration_bounds = array<i64: 1>, scalar_prefetch = 0 : i64, scratch_operands = 0 : i64, tpu.core_type = #tpu.core_type<tc>, window_params = [{transform_indices = @transform_0, window_bounds = array<i64: 4, 8, 128>}, {transform_indices = @transform_1, window_bounds = array<i64: 12, 4>}, {transform_indices = @transform_2, window_bounds = array<i64: 12>}, {transform_indices = @transform_3, window_bounds = array<i64: 8, 12>}, {transform_indices = @transform_4, window_bounds = array<i64: 8>}, {transform_indices = @transform_5, window_bounds = array<i64: 1, 8>}, {transform_indices = @transform_6, window_bounds = array<i64: 1>}, {transform_indices = @transform_7, window_bounds = array<i64: 8, 128>}]} {
    %c0 = arith.constant 0 : index
    %c0_0 = arith.constant 0 : index
    %c0_1 = arith.constant 0 : index
    %0 = vector.load %arg1[%c0, %c0_0, %c0_1] : memref<4x8x128xf32, #tpu.memory_space<vmem>>, vector<1x8x128xf32>
    %1 = vector.shape_cast %0 : vector<1x8x128xf32> to vector<8x128xf32>
    %c1 = arith.constant 1 : index
    %c0_2 = arith.constant 0 : index
    %c0_3 = arith.constant 0 : index
    %2 = vector.load %arg1[%c1, %c0_2, %c0_3] : memref<4x8x128xf32, #tpu.memory_space<vmem>>, vector<1x8x128xf32>
    %3 = vector.shape_cast %2 : vector<1x8x128xf32> to vector<8x128xf32>
    %c2 = arith.constant 2 : index
    %c0_4 = arith.constant 0 : index
    %c0_5 = arith.constant 0 : index
    %4 = vector.load %arg1[%c2, %c0_4, %c0_5] : memref<4x8x128xf32, #tpu.memory_space<vmem>>, vector<1x8x128xf32>
    %5 = vector.shape_cast %4 : vector<1x8x128xf32> to vector<8x128xf32>
    %c3 = arith.constant 3 : index
    %c0_6 = arith.constant 0 : index
    %c0_7 = arith.constant 0 : index
    %6 = vector.load %arg1[%c3, %c0_6, %c0_7] : memref<4x8x128xf32, #tpu.memory_space<vmem>>, vector<1x8x128xf32>
    %7 = vector.shape_cast %6 : vector<1x8x128xf32> to vector<8x128xf32>
    %c0_8 = arith.constant 0 : index
    %c0_9 = arith.constant 0 : index
    %8 = memref.load %arg2[%c0_8, %c0_9] : memref<12x4xf32, #tpu.memory_space<smem>>
    %9 = vector.broadcast %8 : f32 to vector<8x128xf32>
    %10 = arith.mulf %1, %9 : vector<8x128xf32>
    %c0_10 = arith.constant 0 : index
    %11 = memref.load %arg3[%c0_10] : memref<12xf32, #tpu.memory_space<smem>>
    %12 = vector.broadcast %11 : f32 to vector<8x128xf32>
    %13 = arith.addf %10, %12 : vector<8x128xf32>
    %c0_11 = arith.constant 0 : index
    %c1_12 = arith.constant 1 : index
    %14 = memref.load %arg2[%c0_11, %c1_12] : memref<12x4xf32, #tpu.memory_space<smem>>
    %15 = vector.broadcast %14 : f32 to vector<8x128xf32>
    %16 = arith.mulf %3, %15 : vector<8x128xf32>
    %17 = arith.addf %13, %16 : vector<8x128xf32>
    %c0_13 = arith.constant 0 : index
    %c2_14 = arith.constant 2 : index
    %18 = memref.load %arg2[%c0_13, %c2_14] : memref<12x4xf32, #tpu.memory_space<smem>>
    %19 = vector.broadcast %18 : f32 to vector<8x128xf32>
    %20 = arith.mulf %5, %19 : vector<8x128xf32>
    %21 = arith.addf %17, %20 : vector<8x128xf32>
    %c0_15 = arith.constant 0 : index
    %c3_16 = arith.constant 3 : index
    %22 = memref.load %arg2[%c0_15, %c3_16] : memref<12x4xf32, #tpu.memory_space<smem>>
    %23 = vector.broadcast %22 : f32 to vector<8x128xf32>
    %24 = arith.mulf %7, %23 : vector<8x128xf32>
    %25 = arith.addf %21, %24 : vector<8x128xf32>
    %cst = arith.constant 0.000000e+00 : f32
    %26 = vector.broadcast %cst : f32 to vector<8x128xf32>
    %27 = arith.maximumf %25, %26 : vector<8x128xf32>
    %c1_17 = arith.constant 1 : index
    %c0_18 = arith.constant 0 : index
    %28 = memref.load %arg2[%c1_17, %c0_18] : memref<12x4xf32, #tpu.memory_space<smem>>
    %29 = vector.broadcast %28 : f32 to vector<8x128xf32>
    %30 = arith.mulf %1, %29 : vector<8x128xf32>
    %c1_19 = arith.constant 1 : index
    %31 = memref.load %arg3[%c1_19] : memref<12xf32, #tpu.memory_space<smem>>
    %32 = vector.broadcast %31 : f32 to vector<8x128xf32>
    %33 = arith.addf %30, %32 : vector<8x128xf32>
    %c1_20 = arith.constant 1 : index
    %c1_21 = arith.constant 1 : index
    %34 = memref.load %arg2[%c1_20, %c1_21] : memref<12x4xf32, #tpu.memory_space<smem>>
    %35 = vector.broadcast %34 : f32 to vector<8x128xf32>
    %36 = arith.mulf %3, %35 : vector<8x128xf32>
    %37 = arith.addf %33, %36 : vector<8x128xf32>
    %c1_22 = arith.constant 1 : index
    %c2_23 = arith.constant 2 : index
    %38 = memref.load %arg2[%c1_22, %c2_23] : memref<12x4xf32, #tpu.memory_space<smem>>
    %39 = vector.broadcast %38 : f32 to vector<8x128xf32>
    %40 = arith.mulf %5, %39 : vector<8x128xf32>
    %41 = arith.addf %37, %40 : vector<8x128xf32>
    %c1_24 = arith.constant 1 : index
    %c3_25 = arith.constant 3 : index
    %42 = memref.load %arg2[%c1_24, %c3_25] : memref<12x4xf32, #tpu.memory_space<smem>>
    %43 = vector.broadcast %42 : f32 to vector<8x128xf32>
    %44 = arith.mulf %7, %43 : vector<8x128xf32>
    %45 = arith.addf %41, %44 : vector<8x128xf32>
    %cst_26 = arith.constant 0.000000e+00 : f32
    %46 = vector.broadcast %cst_26 : f32 to vector<8x128xf32>
    %47 = arith.maximumf %45, %46 : vector<8x128xf32>
    %c2_27 = arith.constant 2 : index
    %c0_28 = arith.constant 0 : index
    %48 = memref.load %arg2[%c2_27, %c0_28] : memref<12x4xf32, #tpu.memory_space<smem>>
    %49 = vector.broadcast %48 : f32 to vector<8x128xf32>
    %50 = arith.mulf %1, %49 : vector<8x128xf32>
    %c2_29 = arith.constant 2 : index
    %51 = memref.load %arg3[%c2_29] : memref<12xf32, #tpu.memory_space<smem>>
    %52 = vector.broadcast %51 : f32 to vector<8x128xf32>
    %53 = arith.addf %50, %52 : vector<8x128xf32>
    %c2_30 = arith.constant 2 : index
    %c1_31 = arith.constant 1 : index
    %54 = memref.load %arg2[%c2_30, %c1_31] : memref<12x4xf32, #tpu.memory_space<smem>>
    %55 = vector.broadcast %54 : f32 to vector<8x128xf32>
    %56 = arith.mulf %3, %55 : vector<8x128xf32>
    %57 = arith.addf %53, %56 : vector<8x128xf32>
    %c2_32 = arith.constant 2 : index
    %c2_33 = arith.constant 2 : index
    %58 = memref.load %arg2[%c2_32, %c2_33] : memref<12x4xf32, #tpu.memory_space<smem>>
    %59 = vector.broadcast %58 : f32 to vector<8x128xf32>
    %60 = arith.mulf %5, %59 : vector<8x128xf32>
    %61 = arith.addf %57, %60 : vector<8x128xf32>
    %c2_34 = arith.constant 2 : index
    %c3_35 = arith.constant 3 : index
    %62 = memref.load %arg2[%c2_34, %c3_35] : memref<12x4xf32, #tpu.memory_space<smem>>
    %63 = vector.broadcast %62 : f32 to vector<8x128xf32>
    %64 = arith.mulf %7, %63 : vector<8x128xf32>
    %65 = arith.addf %61, %64 : vector<8x128xf32>
    %cst_36 = arith.constant 0.000000e+00 : f32
    %66 = vector.broadcast %cst_36 : f32 to vector<8x128xf32>
    %67 = arith.maximumf %65, %66 : vector<8x128xf32>
    %c3_37 = arith.constant 3 : index
    %c0_38 = arith.constant 0 : index
    %68 = memref.load %arg2[%c3_37, %c0_38] : memref<12x4xf32, #tpu.memory_space<smem>>
    %69 = vector.broadcast %68 : f32 to vector<8x128xf32>
    %70 = arith.mulf %1, %69 : vector<8x128xf32>
    %c3_39 = arith.constant 3 : index
    %71 = memref.load %arg3[%c3_39] : memref<12xf32, #tpu.memory_space<smem>>
    %72 = vector.broadcast %71 : f32 to vector<8x128xf32>
    %73 = arith.addf %70, %72 : vector<8x128xf32>
    %c3_40 = arith.constant 3 : index
    %c1_41 = arith.constant 1 : index
    %74 = memref.load %arg2[%c3_40, %c1_41] : memref<12x4xf32, #tpu.memory_space<smem>>
    %75 = vector.broadcast %74 : f32 to vector<8x128xf32>
    %76 = arith.mulf %3, %75 : vector<8x128xf32>
    %77 = arith.addf %73, %76 : vector<8x128xf32>
    %c3_42 = arith.constant 3 : index
    %c2_43 = arith.constant 2 : index
    %78 = memref.load %arg2[%c3_42, %c2_43] : memref<12x4xf32, #tpu.memory_space<smem>>
    %79 = vector.broadcast %78 : f32 to vector<8x128xf32>
    %80 = arith.mulf %5, %79 : vector<8x128xf32>
    %81 = arith.addf %77, %80 : vector<8x128xf32>
    %c3_44 = arith.constant 3 : index
    %c3_45 = arith.constant 3 : index
    %82 = memref.load %arg2[%c3_44, %c3_45] : memref<12x4xf32, #tpu.memory_space<smem>>
    %83 = vector.broadcast %82 : f32 to vector<8x128xf32>
    %84 = arith.mulf %7, %83 : vector<8x128xf32>
    %85 = arith.addf %81, %84 : vector<8x128xf32>
    %cst_46 = arith.constant 0.000000e+00 : f32
    %86 = vector.broadcast %cst_46 : f32 to vector<8x128xf32>
    %87 = arith.maximumf %85, %86 : vector<8x128xf32>
    %c4 = arith.constant 4 : index
    %c0_47 = arith.constant 0 : index
    %88 = memref.load %arg2[%c4, %c0_47] : memref<12x4xf32, #tpu.memory_space<smem>>
    %89 = vector.broadcast %88 : f32 to vector<8x128xf32>
    %90 = arith.mulf %1, %89 : vector<8x128xf32>
    %c4_48 = arith.constant 4 : index
    %91 = memref.load %arg3[%c4_48] : memref<12xf32, #tpu.memory_space<smem>>
    %92 = vector.broadcast %91 : f32 to vector<8x128xf32>
    %93 = arith.addf %90, %92 : vector<8x128xf32>
    %c4_49 = arith.constant 4 : index
    %c1_50 = arith.constant 1 : index
    %94 = memref.load %arg2[%c4_49, %c1_50] : memref<12x4xf32, #tpu.memory_space<smem>>
    %95 = vector.broadcast %94 : f32 to vector<8x128xf32>
    %96 = arith.mulf %3, %95 : vector<8x128xf32>
    %97 = arith.addf %93, %96 : vector<8x128xf32>
    %c4_51 = arith.constant 4 : index
    %c2_52 = arith.constant 2 : index
    %98 = memref.load %arg2[%c4_51, %c2_52] : memref<12x4xf32, #tpu.memory_space<smem>>
    %99 = vector.broadcast %98 : f32 to vector<8x128xf32>
    %100 = arith.mulf %5, %99 : vector<8x128xf32>
    %101 = arith.addf %97, %100 : vector<8x128xf32>
    %c4_53 = arith.constant 4 : index
    %c3_54 = arith.constant 3 : index
    %102 = memref.load %arg2[%c4_53, %c3_54] : memref<12x4xf32, #tpu.memory_space<smem>>
    %103 = vector.broadcast %102 : f32 to vector<8x128xf32>
    %104 = arith.mulf %7, %103 : vector<8x128xf32>
    %105 = arith.addf %101, %104 : vector<8x128xf32>
    %cst_55 = arith.constant 0.000000e+00 : f32
    %106 = vector.broadcast %cst_55 : f32 to vector<8x128xf32>
    %107 = arith.maximumf %105, %106 : vector<8x128xf32>
    %c5 = arith.constant 5 : index
    %c0_56 = arith.constant 0 : index
    %108 = memref.load %arg2[%c5, %c0_56] : memref<12x4xf32, #tpu.memory_space<smem>>
    %109 = vector.broadcast %108 : f32 to vector<8x128xf32>
    %110 = arith.mulf %1, %109 : vector<8x128xf32>
    %c5_57 = arith.constant 5 : index
    %111 = memref.load %arg3[%c5_57] : memref<12xf32, #tpu.memory_space<smem>>
    %112 = vector.broadcast %111 : f32 to vector<8x128xf32>
    %113 = arith.addf %110, %112 : vector<8x128xf32>
    %c5_58 = arith.constant 5 : index
    %c1_59 = arith.constant 1 : index
    %114 = memref.load %arg2[%c5_58, %c1_59] : memref<12x4xf32, #tpu.memory_space<smem>>
    %115 = vector.broadcast %114 : f32 to vector<8x128xf32>
    %116 = arith.mulf %3, %115 : vector<8x128xf32>
    %117 = arith.addf %113, %116 : vector<8x128xf32>
    %c5_60 = arith.constant 5 : index
    %c2_61 = arith.constant 2 : index
    %118 = memref.load %arg2[%c5_60, %c2_61] : memref<12x4xf32, #tpu.memory_space<smem>>
    %119 = vector.broadcast %118 : f32 to vector<8x128xf32>
    %120 = arith.mulf %5, %119 : vector<8x128xf32>
    %121 = arith.addf %117, %120 : vector<8x128xf32>
    %c5_62 = arith.constant 5 : index
    %c3_63 = arith.constant 3 : index
    %122 = memref.load %arg2[%c5_62, %c3_63] : memref<12x4xf32, #tpu.memory_space<smem>>
    %123 = vector.broadcast %122 : f32 to vector<8x128xf32>
    %124 = arith.mulf %7, %123 : vector<8x128xf32>
    %125 = arith.addf %121, %124 : vector<8x128xf32>
    %cst_64 = arith.constant 0.000000e+00 : f32
    %126 = vector.broadcast %cst_64 : f32 to vector<8x128xf32>
    %127 = arith.maximumf %125, %126 : vector<8x128xf32>
    %c6 = arith.constant 6 : index
    %c0_65 = arith.constant 0 : index
    %128 = memref.load %arg2[%c6, %c0_65] : memref<12x4xf32, #tpu.memory_space<smem>>
    %129 = vector.broadcast %128 : f32 to vector<8x128xf32>
    %130 = arith.mulf %1, %129 : vector<8x128xf32>
    %c6_66 = arith.constant 6 : index
    %131 = memref.load %arg3[%c6_66] : memref<12xf32, #tpu.memory_space<smem>>
    %132 = vector.broadcast %131 : f32 to vector<8x128xf32>
    %133 = arith.addf %130, %132 : vector<8x128xf32>
    %c6_67 = arith.constant 6 : index
    %c1_68 = arith.constant 1 : index
    %134 = memref.load %arg2[%c6_67, %c1_68] : memref<12x4xf32, #tpu.memory_space<smem>>
    %135 = vector.broadcast %134 : f32 to vector<8x128xf32>
    %136 = arith.mulf %3, %135 : vector<8x128xf32>
    %137 = arith.addf %133, %136 : vector<8x128xf32>
    %c6_69 = arith.constant 6 : index
    %c2_70 = arith.constant 2 : index
    %138 = memref.load %arg2[%c6_69, %c2_70] : memref<12x4xf32, #tpu.memory_space<smem>>
    %139 = vector.broadcast %138 : f32 to vector<8x128xf32>
    %140 = arith.mulf %5, %139 : vector<8x128xf32>
    %141 = arith.addf %137, %140 : vector<8x128xf32>
    %c6_71 = arith.constant 6 : index
    %c3_72 = arith.constant 3 : index
    %142 = memref.load %arg2[%c6_71, %c3_72] : memref<12x4xf32, #tpu.memory_space<smem>>
    %143 = vector.broadcast %142 : f32 to vector<8x128xf32>
    %144 = arith.mulf %7, %143 : vector<8x128xf32>
    %145 = arith.addf %141, %144 : vector<8x128xf32>
    %cst_73 = arith.constant 0.000000e+00 : f32
    %146 = vector.broadcast %cst_73 : f32 to vector<8x128xf32>
    %147 = arith.maximumf %145, %146 : vector<8x128xf32>
    %c7 = arith.constant 7 : index
    %c0_74 = arith.constant 0 : index
    %148 = memref.load %arg2[%c7, %c0_74] : memref<12x4xf32, #tpu.memory_space<smem>>
    %149 = vector.broadcast %148 : f32 to vector<8x128xf32>
    %150 = arith.mulf %1, %149 : vector<8x128xf32>
    %c7_75 = arith.constant 7 : index
    %151 = memref.load %arg3[%c7_75] : memref<12xf32, #tpu.memory_space<smem>>
    %152 = vector.broadcast %151 : f32 to vector<8x128xf32>
    %153 = arith.addf %150, %152 : vector<8x128xf32>
    %c7_76 = arith.constant 7 : index
    %c1_77 = arith.constant 1 : index
    %154 = memref.load %arg2[%c7_76, %c1_77] : memref<12x4xf32, #tpu.memory_space<smem>>
    %155 = vector.broadcast %154 : f32 to vector<8x128xf32>
    %156 = arith.mulf %3, %155 : vector<8x128xf32>
    %157 = arith.addf %153, %156 : vector<8x128xf32>
    %c7_78 = arith.constant 7 : index
    %c2_79 = arith.constant 2 : index
    %158 = memref.load %arg2[%c7_78, %c2_79] : memref<12x4xf32, #tpu.memory_space<smem>>
    %159 = vector.broadcast %158 : f32 to vector<8x128xf32>
    %160 = arith.mulf %5, %159 : vector<8x128xf32>
    %161 = arith.addf %157, %160 : vector<8x128xf32>
    %c7_80 = arith.constant 7 : index
    %c3_81 = arith.constant 3 : index
    %162 = memref.load %arg2[%c7_80, %c3_81] : memref<12x4xf32, #tpu.memory_space<smem>>
    %163 = vector.broadcast %162 : f32 to vector<8x128xf32>
    %164 = arith.mulf %7, %163 : vector<8x128xf32>
    %165 = arith.addf %161, %164 : vector<8x128xf32>
    %cst_82 = arith.constant 0.000000e+00 : f32
    %166 = vector.broadcast %cst_82 : f32 to vector<8x128xf32>
    %167 = arith.maximumf %165, %166 : vector<8x128xf32>
    %c8 = arith.constant 8 : index
    %c0_83 = arith.constant 0 : index
    %168 = memref.load %arg2[%c8, %c0_83] : memref<12x4xf32, #tpu.memory_space<smem>>
    %169 = vector.broadcast %168 : f32 to vector<8x128xf32>
    %170 = arith.mulf %1, %169 : vector<8x128xf32>
    %c8_84 = arith.constant 8 : index
    %171 = memref.load %arg3[%c8_84] : memref<12xf32, #tpu.memory_space<smem>>
    %172 = vector.broadcast %171 : f32 to vector<8x128xf32>
    %173 = arith.addf %170, %172 : vector<8x128xf32>
    %c8_85 = arith.constant 8 : index
    %c1_86 = arith.constant 1 : index
    %174 = memref.load %arg2[%c8_85, %c1_86] : memref<12x4xf32, #tpu.memory_space<smem>>
    %175 = vector.broadcast %174 : f32 to vector<8x128xf32>
    %176 = arith.mulf %3, %175 : vector<8x128xf32>
    %177 = arith.addf %173, %176 : vector<8x128xf32>
    %c8_87 = arith.constant 8 : index
    %c2_88 = arith.constant 2 : index
    %178 = memref.load %arg2[%c8_87, %c2_88] : memref<12x4xf32, #tpu.memory_space<smem>>
    %179 = vector.broadcast %178 : f32 to vector<8x128xf32>
    %180 = arith.mulf %5, %179 : vector<8x128xf32>
    %181 = arith.addf %177, %180 : vector<8x128xf32>
    %c8_89 = arith.constant 8 : index
    %c3_90 = arith.constant 3 : index
    %182 = memref.load %arg2[%c8_89, %c3_90] : memref<12x4xf32, #tpu.memory_space<smem>>
    %183 = vector.broadcast %182 : f32 to vector<8x128xf32>
    %184 = arith.mulf %7, %183 : vector<8x128xf32>
    %185 = arith.addf %181, %184 : vector<8x128xf32>
    %cst_91 = arith.constant 0.000000e+00 : f32
    %186 = vector.broadcast %cst_91 : f32 to vector<8x128xf32>
    %187 = arith.maximumf %185, %186 : vector<8x128xf32>
    %c9 = arith.constant 9 : index
    %c0_92 = arith.constant 0 : index
    %188 = memref.load %arg2[%c9, %c0_92] : memref<12x4xf32, #tpu.memory_space<smem>>
    %189 = vector.broadcast %188 : f32 to vector<8x128xf32>
    %190 = arith.mulf %1, %189 : vector<8x128xf32>
    %c9_93 = arith.constant 9 : index
    %191 = memref.load %arg3[%c9_93] : memref<12xf32, #tpu.memory_space<smem>>
    %192 = vector.broadcast %191 : f32 to vector<8x128xf32>
    %193 = arith.addf %190, %192 : vector<8x128xf32>
    %c9_94 = arith.constant 9 : index
    %c1_95 = arith.constant 1 : index
    %194 = memref.load %arg2[%c9_94, %c1_95] : memref<12x4xf32, #tpu.memory_space<smem>>
    %195 = vector.broadcast %194 : f32 to vector<8x128xf32>
    %196 = arith.mulf %3, %195 : vector<8x128xf32>
    %197 = arith.addf %193, %196 : vector<8x128xf32>
    %c9_96 = arith.constant 9 : index
    %c2_97 = arith.constant 2 : index
    %198 = memref.load %arg2[%c9_96, %c2_97] : memref<12x4xf32, #tpu.memory_space<smem>>
    %199 = vector.broadcast %198 : f32 to vector<8x128xf32>
    %200 = arith.mulf %5, %199 : vector<8x128xf32>
    %201 = arith.addf %197, %200 : vector<8x128xf32>
    %c9_98 = arith.constant 9 : index
    %c3_99 = arith.constant 3 : index
    %202 = memref.load %arg2[%c9_98, %c3_99] : memref<12x4xf32, #tpu.memory_space<smem>>
    %203 = vector.broadcast %202 : f32 to vector<8x128xf32>
    %204 = arith.mulf %7, %203 : vector<8x128xf32>
    %205 = arith.addf %201, %204 : vector<8x128xf32>
    %cst_100 = arith.constant 0.000000e+00 : f32
    %206 = vector.broadcast %cst_100 : f32 to vector<8x128xf32>
    %207 = arith.maximumf %205, %206 : vector<8x128xf32>
    %c10 = arith.constant 10 : index
    %c0_101 = arith.constant 0 : index
    %208 = memref.load %arg2[%c10, %c0_101] : memref<12x4xf32, #tpu.memory_space<smem>>
    %209 = vector.broadcast %208 : f32 to vector<8x128xf32>
    %210 = arith.mulf %1, %209 : vector<8x128xf32>
    %c10_102 = arith.constant 10 : index
    %211 = memref.load %arg3[%c10_102] : memref<12xf32, #tpu.memory_space<smem>>
    %212 = vector.broadcast %211 : f32 to vector<8x128xf32>
    %213 = arith.addf %210, %212 : vector<8x128xf32>
    %c10_103 = arith.constant 10 : index
    %c1_104 = arith.constant 1 : index
    %214 = memref.load %arg2[%c10_103, %c1_104] : memref<12x4xf32, #tpu.memory_space<smem>>
    %215 = vector.broadcast %214 : f32 to vector<8x128xf32>
    %216 = arith.mulf %3, %215 : vector<8x128xf32>
    %217 = arith.addf %213, %216 : vector<8x128xf32>
    %c10_105 = arith.constant 10 : index
    %c2_106 = arith.constant 2 : index
    %218 = memref.load %arg2[%c10_105, %c2_106] : memref<12x4xf32, #tpu.memory_space<smem>>
    %219 = vector.broadcast %218 : f32 to vector<8x128xf32>
    %220 = arith.mulf %5, %219 : vector<8x128xf32>
    %221 = arith.addf %217, %220 : vector<8x128xf32>
    %c10_107 = arith.constant 10 : index
    %c3_108 = arith.constant 3 : index
    %222 = memref.load %arg2[%c10_107, %c3_108] : memref<12x4xf32, #tpu.memory_space<smem>>
    %223 = vector.broadcast %222 : f32 to vector<8x128xf32>
    %224 = arith.mulf %7, %223 : vector<8x128xf32>
    %225 = arith.addf %221, %224 : vector<8x128xf32>
    %cst_109 = arith.constant 0.000000e+00 : f32
    %226 = vector.broadcast %cst_109 : f32 to vector<8x128xf32>
    %227 = arith.maximumf %225, %226 : vector<8x128xf32>
    %c11 = arith.constant 11 : index
    %c0_110 = arith.constant 0 : index
    %228 = memref.load %arg2[%c11, %c0_110] : memref<12x4xf32, #tpu.memory_space<smem>>
    %229 = vector.broadcast %228 : f32 to vector<8x128xf32>
    %230 = arith.mulf %1, %229 : vector<8x128xf32>
    %c11_111 = arith.constant 11 : index
    %231 = memref.load %arg3[%c11_111] : memref<12xf32, #tpu.memory_space<smem>>
    %232 = vector.broadcast %231 : f32 to vector<8x128xf32>
    %233 = arith.addf %230, %232 : vector<8x128xf32>
    %c11_112 = arith.constant 11 : index
    %c1_113 = arith.constant 1 : index
    %234 = memref.load %arg2[%c11_112, %c1_113] : memref<12x4xf32, #tpu.memory_space<smem>>
    %235 = vector.broadcast %234 : f32 to vector<8x128xf32>
    %236 = arith.mulf %3, %235 : vector<8x128xf32>
    %237 = arith.addf %233, %236 : vector<8x128xf32>
    %c11_114 = arith.constant 11 : index
    %c2_115 = arith.constant 2 : index
    %238 = memref.load %arg2[%c11_114, %c2_115] : memref<12x4xf32, #tpu.memory_space<smem>>
    %239 = vector.broadcast %238 : f32 to vector<8x128xf32>
    %240 = arith.mulf %5, %239 : vector<8x128xf32>
    %241 = arith.addf %237, %240 : vector<8x128xf32>
    %c11_116 = arith.constant 11 : index
    %c3_117 = arith.constant 3 : index
    %242 = memref.load %arg2[%c11_116, %c3_117] : memref<12x4xf32, #tpu.memory_space<smem>>
    %243 = vector.broadcast %242 : f32 to vector<8x128xf32>
    %244 = arith.mulf %7, %243 : vector<8x128xf32>
    %245 = arith.addf %241, %244 : vector<8x128xf32>
    %cst_118 = arith.constant 0.000000e+00 : f32
    %246 = vector.broadcast %cst_118 : f32 to vector<8x128xf32>
    %247 = arith.maximumf %245, %246 : vector<8x128xf32>
    %c0_119 = arith.constant 0 : index
    %c0_120 = arith.constant 0 : index
    %248 = memref.load %arg4[%c0_119, %c0_120] : memref<8x12xf32, #tpu.memory_space<smem>>
    %249 = vector.broadcast %248 : f32 to vector<8x128xf32>
    %250 = arith.mulf %27, %249 : vector<8x128xf32>
    %c0_121 = arith.constant 0 : index
    %251 = memref.load %arg5[%c0_121] : memref<8xf32, #tpu.memory_space<smem>>
    %252 = vector.broadcast %251 : f32 to vector<8x128xf32>
    %253 = arith.addf %250, %252 : vector<8x128xf32>
    %c0_122 = arith.constant 0 : index
    %c1_123 = arith.constant 1 : index
    %254 = memref.load %arg4[%c0_122, %c1_123] : memref<8x12xf32, #tpu.memory_space<smem>>
    %255 = vector.broadcast %254 : f32 to vector<8x128xf32>
    %256 = arith.mulf %47, %255 : vector<8x128xf32>
    %257 = arith.addf %253, %256 : vector<8x128xf32>
    %c0_124 = arith.constant 0 : index
    %c2_125 = arith.constant 2 : index
    %258 = memref.load %arg4[%c0_124, %c2_125] : memref<8x12xf32, #tpu.memory_space<smem>>
    %259 = vector.broadcast %258 : f32 to vector<8x128xf32>
    %260 = arith.mulf %67, %259 : vector<8x128xf32>
    %261 = arith.addf %257, %260 : vector<8x128xf32>
    %c0_126 = arith.constant 0 : index
    %c3_127 = arith.constant 3 : index
    %262 = memref.load %arg4[%c0_126, %c3_127] : memref<8x12xf32, #tpu.memory_space<smem>>
    %263 = vector.broadcast %262 : f32 to vector<8x128xf32>
    %264 = arith.mulf %87, %263 : vector<8x128xf32>
    %265 = arith.addf %261, %264 : vector<8x128xf32>
    %c0_128 = arith.constant 0 : index
    %c4_129 = arith.constant 4 : index
    %266 = memref.load %arg4[%c0_128, %c4_129] : memref<8x12xf32, #tpu.memory_space<smem>>
    %267 = vector.broadcast %266 : f32 to vector<8x128xf32>
    %268 = arith.mulf %107, %267 : vector<8x128xf32>
    %269 = arith.addf %265, %268 : vector<8x128xf32>
    %c0_130 = arith.constant 0 : index
    %c5_131 = arith.constant 5 : index
    %270 = memref.load %arg4[%c0_130, %c5_131] : memref<8x12xf32, #tpu.memory_space<smem>>
    %271 = vector.broadcast %270 : f32 to vector<8x128xf32>
    %272 = arith.mulf %127, %271 : vector<8x128xf32>
    %273 = arith.addf %269, %272 : vector<8x128xf32>
    %c0_132 = arith.constant 0 : index
    %c6_133 = arith.constant 6 : index
    %274 = memref.load %arg4[%c0_132, %c6_133] : memref<8x12xf32, #tpu.memory_space<smem>>
    %275 = vector.broadcast %274 : f32 to vector<8x128xf32>
    %276 = arith.mulf %147, %275 : vector<8x128xf32>
    %277 = arith.addf %273, %276 : vector<8x128xf32>
    %c0_134 = arith.constant 0 : index
    %c7_135 = arith.constant 7 : index
    %278 = memref.load %arg4[%c0_134, %c7_135] : memref<8x12xf32, #tpu.memory_space<smem>>
    %279 = vector.broadcast %278 : f32 to vector<8x128xf32>
    %280 = arith.mulf %167, %279 : vector<8x128xf32>
    %281 = arith.addf %277, %280 : vector<8x128xf32>
    %c0_136 = arith.constant 0 : index
    %c8_137 = arith.constant 8 : index
    %282 = memref.load %arg4[%c0_136, %c8_137] : memref<8x12xf32, #tpu.memory_space<smem>>
    %283 = vector.broadcast %282 : f32 to vector<8x128xf32>
    %284 = arith.mulf %187, %283 : vector<8x128xf32>
    %285 = arith.addf %281, %284 : vector<8x128xf32>
    %c0_138 = arith.constant 0 : index
    %c9_139 = arith.constant 9 : index
    %286 = memref.load %arg4[%c0_138, %c9_139] : memref<8x12xf32, #tpu.memory_space<smem>>
    %287 = vector.broadcast %286 : f32 to vector<8x128xf32>
    %288 = arith.mulf %207, %287 : vector<8x128xf32>
    %289 = arith.addf %285, %288 : vector<8x128xf32>
    %c0_140 = arith.constant 0 : index
    %c10_141 = arith.constant 10 : index
    %290 = memref.load %arg4[%c0_140, %c10_141] : memref<8x12xf32, #tpu.memory_space<smem>>
    %291 = vector.broadcast %290 : f32 to vector<8x128xf32>
    %292 = arith.mulf %227, %291 : vector<8x128xf32>
    %293 = arith.addf %289, %292 : vector<8x128xf32>
    %c0_142 = arith.constant 0 : index
    %c11_143 = arith.constant 11 : index
    %294 = memref.load %arg4[%c0_142, %c11_143] : memref<8x12xf32, #tpu.memory_space<smem>>
    %295 = vector.broadcast %294 : f32 to vector<8x128xf32>
    %296 = arith.mulf %247, %295 : vector<8x128xf32>
    %297 = arith.addf %293, %296 : vector<8x128xf32>
    %cst_144 = arith.constant 0.000000e+00 : f32
    %298 = vector.broadcast %cst_144 : f32 to vector<8x128xf32>
    %299 = arith.maximumf %297, %298 : vector<8x128xf32>
    %c1_145 = arith.constant 1 : index
    %c0_146 = arith.constant 0 : index
    %300 = memref.load %arg4[%c1_145, %c0_146] : memref<8x12xf32, #tpu.memory_space<smem>>
    %301 = vector.broadcast %300 : f32 to vector<8x128xf32>
    %302 = arith.mulf %27, %301 : vector<8x128xf32>
    %c1_147 = arith.constant 1 : index
    %303 = memref.load %arg5[%c1_147] : memref<8xf32, #tpu.memory_space<smem>>
    %304 = vector.broadcast %303 : f32 to vector<8x128xf32>
    %305 = arith.addf %302, %304 : vector<8x128xf32>
    %c1_148 = arith.constant 1 : index
    %c1_149 = arith.constant 1 : index
    %306 = memref.load %arg4[%c1_148, %c1_149] : memref<8x12xf32, #tpu.memory_space<smem>>
    %307 = vector.broadcast %306 : f32 to vector<8x128xf32>
    %308 = arith.mulf %47, %307 : vector<8x128xf32>
    %309 = arith.addf %305, %308 : vector<8x128xf32>
    %c1_150 = arith.constant 1 : index
    %c2_151 = arith.constant 2 : index
    %310 = memref.load %arg4[%c1_150, %c2_151] : memref<8x12xf32, #tpu.memory_space<smem>>
    %311 = vector.broadcast %310 : f32 to vector<8x128xf32>
    %312 = arith.mulf %67, %311 : vector<8x128xf32>
    %313 = arith.addf %309, %312 : vector<8x128xf32>
    %c1_152 = arith.constant 1 : index
    %c3_153 = arith.constant 3 : index
    %314 = memref.load %arg4[%c1_152, %c3_153] : memref<8x12xf32, #tpu.memory_space<smem>>
    %315 = vector.broadcast %314 : f32 to vector<8x128xf32>
    %316 = arith.mulf %87, %315 : vector<8x128xf32>
    %317 = arith.addf %313, %316 : vector<8x128xf32>
    %c1_154 = arith.constant 1 : index
    %c4_155 = arith.constant 4 : index
    %318 = memref.load %arg4[%c1_154, %c4_155] : memref<8x12xf32, #tpu.memory_space<smem>>
    %319 = vector.broadcast %318 : f32 to vector<8x128xf32>
    %320 = arith.mulf %107, %319 : vector<8x128xf32>
    %321 = arith.addf %317, %320 : vector<8x128xf32>
    %c1_156 = arith.constant 1 : index
    %c5_157 = arith.constant 5 : index
    %322 = memref.load %arg4[%c1_156, %c5_157] : memref<8x12xf32, #tpu.memory_space<smem>>
    %323 = vector.broadcast %322 : f32 to vector<8x128xf32>
    %324 = arith.mulf %127, %323 : vector<8x128xf32>
    %325 = arith.addf %321, %324 : vector<8x128xf32>
    %c1_158 = arith.constant 1 : index
    %c6_159 = arith.constant 6 : index
    %326 = memref.load %arg4[%c1_158, %c6_159] : memref<8x12xf32, #tpu.memory_space<smem>>
    %327 = vector.broadcast %326 : f32 to vector<8x128xf32>
    %328 = arith.mulf %147, %327 : vector<8x128xf32>
    %329 = arith.addf %325, %328 : vector<8x128xf32>
    %c1_160 = arith.constant 1 : index
    %c7_161 = arith.constant 7 : index
    %330 = memref.load %arg4[%c1_160, %c7_161] : memref<8x12xf32, #tpu.memory_space<smem>>
    %331 = vector.broadcast %330 : f32 to vector<8x128xf32>
    %332 = arith.mulf %167, %331 : vector<8x128xf32>
    %333 = arith.addf %329, %332 : vector<8x128xf32>
    %c1_162 = arith.constant 1 : index
    %c8_163 = arith.constant 8 : index
    %334 = memref.load %arg4[%c1_162, %c8_163] : memref<8x12xf32, #tpu.memory_space<smem>>
    %335 = vector.broadcast %334 : f32 to vector<8x128xf32>
    %336 = arith.mulf %187, %335 : vector<8x128xf32>
    %337 = arith.addf %333, %336 : vector<8x128xf32>
    %c1_164 = arith.constant 1 : index
    %c9_165 = arith.constant 9 : index
    %338 = memref.load %arg4[%c1_164, %c9_165] : memref<8x12xf32, #tpu.memory_space<smem>>
    %339 = vector.broadcast %338 : f32 to vector<8x128xf32>
    %340 = arith.mulf %207, %339 : vector<8x128xf32>
    %341 = arith.addf %337, %340 : vector<8x128xf32>
    %c1_166 = arith.constant 1 : index
    %c10_167 = arith.constant 10 : index
    %342 = memref.load %arg4[%c1_166, %c10_167] : memref<8x12xf32, #tpu.memory_space<smem>>
    %343 = vector.broadcast %342 : f32 to vector<8x128xf32>
    %344 = arith.mulf %227, %343 : vector<8x128xf32>
    %345 = arith.addf %341, %344 : vector<8x128xf32>
    %c1_168 = arith.constant 1 : index
    %c11_169 = arith.constant 11 : index
    %346 = memref.load %arg4[%c1_168, %c11_169] : memref<8x12xf32, #tpu.memory_space<smem>>
    %347 = vector.broadcast %346 : f32 to vector<8x128xf32>
    %348 = arith.mulf %247, %347 : vector<8x128xf32>
    %349 = arith.addf %345, %348 : vector<8x128xf32>
    %cst_170 = arith.constant 0.000000e+00 : f32
    %350 = vector.broadcast %cst_170 : f32 to vector<8x128xf32>
    %351 = arith.maximumf %349, %350 : vector<8x128xf32>
    %c2_171 = arith.constant 2 : index
    %c0_172 = arith.constant 0 : index
    %352 = memref.load %arg4[%c2_171, %c0_172] : memref<8x12xf32, #tpu.memory_space<smem>>
    %353 = vector.broadcast %352 : f32 to vector<8x128xf32>
    %354 = arith.mulf %27, %353 : vector<8x128xf32>
    %c2_173 = arith.constant 2 : index
    %355 = memref.load %arg5[%c2_173] : memref<8xf32, #tpu.memory_space<smem>>
    %356 = vector.broadcast %355 : f32 to vector<8x128xf32>
    %357 = arith.addf %354, %356 : vector<8x128xf32>
    %c2_174 = arith.constant 2 : index
    %c1_175 = arith.constant 1 : index
    %358 = memref.load %arg4[%c2_174, %c1_175] : memref<8x12xf32, #tpu.memory_space<smem>>
    %359 = vector.broadcast %358 : f32 to vector<8x128xf32>
    %360 = arith.mulf %47, %359 : vector<8x128xf32>
    %361 = arith.addf %357, %360 : vector<8x128xf32>
    %c2_176 = arith.constant 2 : index
    %c2_177 = arith.constant 2 : index
    %362 = memref.load %arg4[%c2_176, %c2_177] : memref<8x12xf32, #tpu.memory_space<smem>>
    %363 = vector.broadcast %362 : f32 to vector<8x128xf32>
    %364 = arith.mulf %67, %363 : vector<8x128xf32>
    %365 = arith.addf %361, %364 : vector<8x128xf32>
    %c2_178 = arith.constant 2 : index
    %c3_179 = arith.constant 3 : index
    %366 = memref.load %arg4[%c2_178, %c3_179] : memref<8x12xf32, #tpu.memory_space<smem>>
    %367 = vector.broadcast %366 : f32 to vector<8x128xf32>
    %368 = arith.mulf %87, %367 : vector<8x128xf32>
    %369 = arith.addf %365, %368 : vector<8x128xf32>
    %c2_180 = arith.constant 2 : index
    %c4_181 = arith.constant 4 : index
    %370 = memref.load %arg4[%c2_180, %c4_181] : memref<8x12xf32, #tpu.memory_space<smem>>
    %371 = vector.broadcast %370 : f32 to vector<8x128xf32>
    %372 = arith.mulf %107, %371 : vector<8x128xf32>
    %373 = arith.addf %369, %372 : vector<8x128xf32>
    %c2_182 = arith.constant 2 : index
    %c5_183 = arith.constant 5 : index
    %374 = memref.load %arg4[%c2_182, %c5_183] : memref<8x12xf32, #tpu.memory_space<smem>>
    %375 = vector.broadcast %374 : f32 to vector<8x128xf32>
    %376 = arith.mulf %127, %375 : vector<8x128xf32>
    %377 = arith.addf %373, %376 : vector<8x128xf32>
    %c2_184 = arith.constant 2 : index
    %c6_185 = arith.constant 6 : index
    %378 = memref.load %arg4[%c2_184, %c6_185] : memref<8x12xf32, #tpu.memory_space<smem>>
    %379 = vector.broadcast %378 : f32 to vector<8x128xf32>
    %380 = arith.mulf %147, %379 : vector<8x128xf32>
    %381 = arith.addf %377, %380 : vector<8x128xf32>
    %c2_186 = arith.constant 2 : index
    %c7_187 = arith.constant 7 : index
    %382 = memref.load %arg4[%c2_186, %c7_187] : memref<8x12xf32, #tpu.memory_space<smem>>
    %383 = vector.broadcast %382 : f32 to vector<8x128xf32>
    %384 = arith.mulf %167, %383 : vector<8x128xf32>
    %385 = arith.addf %381, %384 : vector<8x128xf32>
    %c2_188 = arith.constant 2 : index
    %c8_189 = arith.constant 8 : index
    %386 = memref.load %arg4[%c2_188, %c8_189] : memref<8x12xf32, #tpu.memory_space<smem>>
    %387 = vector.broadcast %386 : f32 to vector<8x128xf32>
    %388 = arith.mulf %187, %387 : vector<8x128xf32>
    %389 = arith.addf %385, %388 : vector<8x128xf32>
    %c2_190 = arith.constant 2 : index
    %c9_191 = arith.constant 9 : index
    %390 = memref.load %arg4[%c2_190, %c9_191] : memref<8x12xf32, #tpu.memory_space<smem>>
    %391 = vector.broadcast %390 : f32 to vector<8x128xf32>
    %392 = arith.mulf %207, %391 : vector<8x128xf32>
    %393 = arith.addf %389, %392 : vector<8x128xf32>
    %c2_192 = arith.constant 2 : index
    %c10_193 = arith.constant 10 : index
    %394 = memref.load %arg4[%c2_192, %c10_193] : memref<8x12xf32, #tpu.memory_space<smem>>
    %395 = vector.broadcast %394 : f32 to vector<8x128xf32>
    %396 = arith.mulf %227, %395 : vector<8x128xf32>
    %397 = arith.addf %393, %396 : vector<8x128xf32>
    %c2_194 = arith.constant 2 : index
    %c11_195 = arith.constant 11 : index
    %398 = memref.load %arg4[%c2_194, %c11_195] : memref<8x12xf32, #tpu.memory_space<smem>>
    %399 = vector.broadcast %398 : f32 to vector<8x128xf32>
    %400 = arith.mulf %247, %399 : vector<8x128xf32>
    %401 = arith.addf %397, %400 : vector<8x128xf32>
    %cst_196 = arith.constant 0.000000e+00 : f32
    %402 = vector.broadcast %cst_196 : f32 to vector<8x128xf32>
    %403 = arith.maximumf %401, %402 : vector<8x128xf32>
    %c3_197 = arith.constant 3 : index
    %c0_198 = arith.constant 0 : index
    %404 = memref.load %arg4[%c3_197, %c0_198] : memref<8x12xf32, #tpu.memory_space<smem>>
    %405 = vector.broadcast %404 : f32 to vector<8x128xf32>
    %406 = arith.mulf %27, %405 : vector<8x128xf32>
    %c3_199 = arith.constant 3 : index
    %407 = memref.load %arg5[%c3_199] : memref<8xf32, #tpu.memory_space<smem>>
    %408 = vector.broadcast %407 : f32 to vector<8x128xf32>
    %409 = arith.addf %406, %408 : vector<8x128xf32>
    %c3_200 = arith.constant 3 : index
    %c1_201 = arith.constant 1 : index
    %410 = memref.load %arg4[%c3_200, %c1_201] : memref<8x12xf32, #tpu.memory_space<smem>>
    %411 = vector.broadcast %410 : f32 to vector<8x128xf32>
    %412 = arith.mulf %47, %411 : vector<8x128xf32>
    %413 = arith.addf %409, %412 : vector<8x128xf32>
    %c3_202 = arith.constant 3 : index
    %c2_203 = arith.constant 2 : index
    %414 = memref.load %arg4[%c3_202, %c2_203] : memref<8x12xf32, #tpu.memory_space<smem>>
    %415 = vector.broadcast %414 : f32 to vector<8x128xf32>
    %416 = arith.mulf %67, %415 : vector<8x128xf32>
    %417 = arith.addf %413, %416 : vector<8x128xf32>
    %c3_204 = arith.constant 3 : index
    %c3_205 = arith.constant 3 : index
    %418 = memref.load %arg4[%c3_204, %c3_205] : memref<8x12xf32, #tpu.memory_space<smem>>
    %419 = vector.broadcast %418 : f32 to vector<8x128xf32>
    %420 = arith.mulf %87, %419 : vector<8x128xf32>
    %421 = arith.addf %417, %420 : vector<8x128xf32>
    %c3_206 = arith.constant 3 : index
    %c4_207 = arith.constant 4 : index
    %422 = memref.load %arg4[%c3_206, %c4_207] : memref<8x12xf32, #tpu.memory_space<smem>>
    %423 = vector.broadcast %422 : f32 to vector<8x128xf32>
    %424 = arith.mulf %107, %423 : vector<8x128xf32>
    %425 = arith.addf %421, %424 : vector<8x128xf32>
    %c3_208 = arith.constant 3 : index
    %c5_209 = arith.constant 5 : index
    %426 = memref.load %arg4[%c3_208, %c5_209] : memref<8x12xf32, #tpu.memory_space<smem>>
    %427 = vector.broadcast %426 : f32 to vector<8x128xf32>
    %428 = arith.mulf %127, %427 : vector<8x128xf32>
    %429 = arith.addf %425, %428 : vector<8x128xf32>
    %c3_210 = arith.constant 3 : index
    %c6_211 = arith.constant 6 : index
    %430 = memref.load %arg4[%c3_210, %c6_211] : memref<8x12xf32, #tpu.memory_space<smem>>
    %431 = vector.broadcast %430 : f32 to vector<8x128xf32>
    %432 = arith.mulf %147, %431 : vector<8x128xf32>
    %433 = arith.addf %429, %432 : vector<8x128xf32>
    %c3_212 = arith.constant 3 : index
    %c7_213 = arith.constant 7 : index
    %434 = memref.load %arg4[%c3_212, %c7_213] : memref<8x12xf32, #tpu.memory_space<smem>>
    %435 = vector.broadcast %434 : f32 to vector<8x128xf32>
    %436 = arith.mulf %167, %435 : vector<8x128xf32>
    %437 = arith.addf %433, %436 : vector<8x128xf32>
    %c3_214 = arith.constant 3 : index
    %c8_215 = arith.constant 8 : index
    %438 = memref.load %arg4[%c3_214, %c8_215] : memref<8x12xf32, #tpu.memory_space<smem>>
    %439 = vector.broadcast %438 : f32 to vector<8x128xf32>
    %440 = arith.mulf %187, %439 : vector<8x128xf32>
    %441 = arith.addf %437, %440 : vector<8x128xf32>
    %c3_216 = arith.constant 3 : index
    %c9_217 = arith.constant 9 : index
    %442 = memref.load %arg4[%c3_216, %c9_217] : memref<8x12xf32, #tpu.memory_space<smem>>
    %443 = vector.broadcast %442 : f32 to vector<8x128xf32>
    %444 = arith.mulf %207, %443 : vector<8x128xf32>
    %445 = arith.addf %441, %444 : vector<8x128xf32>
    %c3_218 = arith.constant 3 : index
    %c10_219 = arith.constant 10 : index
    %446 = memref.load %arg4[%c3_218, %c10_219] : memref<8x12xf32, #tpu.memory_space<smem>>
    %447 = vector.broadcast %446 : f32 to vector<8x128xf32>
    %448 = arith.mulf %227, %447 : vector<8x128xf32>
    %449 = arith.addf %445, %448 : vector<8x128xf32>
    %c3_220 = arith.constant 3 : index
    %c11_221 = arith.constant 11 : index
    %450 = memref.load %arg4[%c3_220, %c11_221] : memref<8x12xf32, #tpu.memory_space<smem>>
    %451 = vector.broadcast %450 : f32 to vector<8x128xf32>
    %452 = arith.mulf %247, %451 : vector<8x128xf32>
    %453 = arith.addf %449, %452 : vector<8x128xf32>
    %cst_222 = arith.constant 0.000000e+00 : f32
    %454 = vector.broadcast %cst_222 : f32 to vector<8x128xf32>
    %455 = arith.maximumf %453, %454 : vector<8x128xf32>
    %c4_223 = arith.constant 4 : index
    %c0_224 = arith.constant 0 : index
    %456 = memref.load %arg4[%c4_223, %c0_224] : memref<8x12xf32, #tpu.memory_space<smem>>
    %457 = vector.broadcast %456 : f32 to vector<8x128xf32>
    %458 = arith.mulf %27, %457 : vector<8x128xf32>
    %c4_225 = arith.constant 4 : index
    %459 = memref.load %arg5[%c4_225] : memref<8xf32, #tpu.memory_space<smem>>
    %460 = vector.broadcast %459 : f32 to vector<8x128xf32>
    %461 = arith.addf %458, %460 : vector<8x128xf32>
    %c4_226 = arith.constant 4 : index
    %c1_227 = arith.constant 1 : index
    %462 = memref.load %arg4[%c4_226, %c1_227] : memref<8x12xf32, #tpu.memory_space<smem>>
    %463 = vector.broadcast %462 : f32 to vector<8x128xf32>
    %464 = arith.mulf %47, %463 : vector<8x128xf32>
    %465 = arith.addf %461, %464 : vector<8x128xf32>
    %c4_228 = arith.constant 4 : index
    %c2_229 = arith.constant 2 : index
    %466 = memref.load %arg4[%c4_228, %c2_229] : memref<8x12xf32, #tpu.memory_space<smem>>
    %467 = vector.broadcast %466 : f32 to vector<8x128xf32>
    %468 = arith.mulf %67, %467 : vector<8x128xf32>
    %469 = arith.addf %465, %468 : vector<8x128xf32>
    %c4_230 = arith.constant 4 : index
    %c3_231 = arith.constant 3 : index
    %470 = memref.load %arg4[%c4_230, %c3_231] : memref<8x12xf32, #tpu.memory_space<smem>>
    %471 = vector.broadcast %470 : f32 to vector<8x128xf32>
    %472 = arith.mulf %87, %471 : vector<8x128xf32>
    %473 = arith.addf %469, %472 : vector<8x128xf32>
    %c4_232 = arith.constant 4 : index
    %c4_233 = arith.constant 4 : index
    %474 = memref.load %arg4[%c4_232, %c4_233] : memref<8x12xf32, #tpu.memory_space<smem>>
    %475 = vector.broadcast %474 : f32 to vector<8x128xf32>
    %476 = arith.mulf %107, %475 : vector<8x128xf32>
    %477 = arith.addf %473, %476 : vector<8x128xf32>
    %c4_234 = arith.constant 4 : index
    %c5_235 = arith.constant 5 : index
    %478 = memref.load %arg4[%c4_234, %c5_235] : memref<8x12xf32, #tpu.memory_space<smem>>
    %479 = vector.broadcast %478 : f32 to vector<8x128xf32>
    %480 = arith.mulf %127, %479 : vector<8x128xf32>
    %481 = arith.addf %477, %480 : vector<8x128xf32>
    %c4_236 = arith.constant 4 : index
    %c6_237 = arith.constant 6 : index
    %482 = memref.load %arg4[%c4_236, %c6_237] : memref<8x12xf32, #tpu.memory_space<smem>>
    %483 = vector.broadcast %482 : f32 to vector<8x128xf32>
    %484 = arith.mulf %147, %483 : vector<8x128xf32>
    %485 = arith.addf %481, %484 : vector<8x128xf32>
    %c4_238 = arith.constant 4 : index
    %c7_239 = arith.constant 7 : index
    %486 = memref.load %arg4[%c4_238, %c7_239] : memref<8x12xf32, #tpu.memory_space<smem>>
    %487 = vector.broadcast %486 : f32 to vector<8x128xf32>
    %488 = arith.mulf %167, %487 : vector<8x128xf32>
    %489 = arith.addf %485, %488 : vector<8x128xf32>
    %c4_240 = arith.constant 4 : index
    %c8_241 = arith.constant 8 : index
    %490 = memref.load %arg4[%c4_240, %c8_241] : memref<8x12xf32, #tpu.memory_space<smem>>
    %491 = vector.broadcast %490 : f32 to vector<8x128xf32>
    %492 = arith.mulf %187, %491 : vector<8x128xf32>
    %493 = arith.addf %489, %492 : vector<8x128xf32>
    %c4_242 = arith.constant 4 : index
    %c9_243 = arith.constant 9 : index
    %494 = memref.load %arg4[%c4_242, %c9_243] : memref<8x12xf32, #tpu.memory_space<smem>>
    %495 = vector.broadcast %494 : f32 to vector<8x128xf32>
    %496 = arith.mulf %207, %495 : vector<8x128xf32>
    %497 = arith.addf %493, %496 : vector<8x128xf32>
    %c4_244 = arith.constant 4 : index
    %c10_245 = arith.constant 10 : index
    %498 = memref.load %arg4[%c4_244, %c10_245] : memref<8x12xf32, #tpu.memory_space<smem>>
    %499 = vector.broadcast %498 : f32 to vector<8x128xf32>
    %500 = arith.mulf %227, %499 : vector<8x128xf32>
    %501 = arith.addf %497, %500 : vector<8x128xf32>
    %c4_246 = arith.constant 4 : index
    %c11_247 = arith.constant 11 : index
    %502 = memref.load %arg4[%c4_246, %c11_247] : memref<8x12xf32, #tpu.memory_space<smem>>
    %503 = vector.broadcast %502 : f32 to vector<8x128xf32>
    %504 = arith.mulf %247, %503 : vector<8x128xf32>
    %505 = arith.addf %501, %504 : vector<8x128xf32>
    %cst_248 = arith.constant 0.000000e+00 : f32
    %506 = vector.broadcast %cst_248 : f32 to vector<8x128xf32>
    %507 = arith.maximumf %505, %506 : vector<8x128xf32>
    %c5_249 = arith.constant 5 : index
    %c0_250 = arith.constant 0 : index
    %508 = memref.load %arg4[%c5_249, %c0_250] : memref<8x12xf32, #tpu.memory_space<smem>>
    %509 = vector.broadcast %508 : f32 to vector<8x128xf32>
    %510 = arith.mulf %27, %509 : vector<8x128xf32>
    %c5_251 = arith.constant 5 : index
    %511 = memref.load %arg5[%c5_251] : memref<8xf32, #tpu.memory_space<smem>>
    %512 = vector.broadcast %511 : f32 to vector<8x128xf32>
    %513 = arith.addf %510, %512 : vector<8x128xf32>
    %c5_252 = arith.constant 5 : index
    %c1_253 = arith.constant 1 : index
    %514 = memref.load %arg4[%c5_252, %c1_253] : memref<8x12xf32, #tpu.memory_space<smem>>
    %515 = vector.broadcast %514 : f32 to vector<8x128xf32>
    %516 = arith.mulf %47, %515 : vector<8x128xf32>
    %517 = arith.addf %513, %516 : vector<8x128xf32>
    %c5_254 = arith.constant 5 : index
    %c2_255 = arith.constant 2 : index
    %518 = memref.load %arg4[%c5_254, %c2_255] : memref<8x12xf32, #tpu.memory_space<smem>>
    %519 = vector.broadcast %518 : f32 to vector<8x128xf32>
    %520 = arith.mulf %67, %519 : vector<8x128xf32>
    %521 = arith.addf %517, %520 : vector<8x128xf32>
    %c5_256 = arith.constant 5 : index
    %c3_257 = arith.constant 3 : index
    %522 = memref.load %arg4[%c5_256, %c3_257] : memref<8x12xf32, #tpu.memory_space<smem>>
    %523 = vector.broadcast %522 : f32 to vector<8x128xf32>
    %524 = arith.mulf %87, %523 : vector<8x128xf32>
    %525 = arith.addf %521, %524 : vector<8x128xf32>
    %c5_258 = arith.constant 5 : index
    %c4_259 = arith.constant 4 : index
    %526 = memref.load %arg4[%c5_258, %c4_259] : memref<8x12xf32, #tpu.memory_space<smem>>
    %527 = vector.broadcast %526 : f32 to vector<8x128xf32>
    %528 = arith.mulf %107, %527 : vector<8x128xf32>
    %529 = arith.addf %525, %528 : vector<8x128xf32>
    %c5_260 = arith.constant 5 : index
    %c5_261 = arith.constant 5 : index
    %530 = memref.load %arg4[%c5_260, %c5_261] : memref<8x12xf32, #tpu.memory_space<smem>>
    %531 = vector.broadcast %530 : f32 to vector<8x128xf32>
    %532 = arith.mulf %127, %531 : vector<8x128xf32>
    %533 = arith.addf %529, %532 : vector<8x128xf32>
    %c5_262 = arith.constant 5 : index
    %c6_263 = arith.constant 6 : index
    %534 = memref.load %arg4[%c5_262, %c6_263] : memref<8x12xf32, #tpu.memory_space<smem>>
    %535 = vector.broadcast %534 : f32 to vector<8x128xf32>
    %536 = arith.mulf %147, %535 : vector<8x128xf32>
    %537 = arith.addf %533, %536 : vector<8x128xf32>
    %c5_264 = arith.constant 5 : index
    %c7_265 = arith.constant 7 : index
    %538 = memref.load %arg4[%c5_264, %c7_265] : memref<8x12xf32, #tpu.memory_space<smem>>
    %539 = vector.broadcast %538 : f32 to vector<8x128xf32>
    %540 = arith.mulf %167, %539 : vector<8x128xf32>
    %541 = arith.addf %537, %540 : vector<8x128xf32>
    %c5_266 = arith.constant 5 : index
    %c8_267 = arith.constant 8 : index
    %542 = memref.load %arg4[%c5_266, %c8_267] : memref<8x12xf32, #tpu.memory_space<smem>>
    %543 = vector.broadcast %542 : f32 to vector<8x128xf32>
    %544 = arith.mulf %187, %543 : vector<8x128xf32>
    %545 = arith.addf %541, %544 : vector<8x128xf32>
    %c5_268 = arith.constant 5 : index
    %c9_269 = arith.constant 9 : index
    %546 = memref.load %arg4[%c5_268, %c9_269] : memref<8x12xf32, #tpu.memory_space<smem>>
    %547 = vector.broadcast %546 : f32 to vector<8x128xf32>
    %548 = arith.mulf %207, %547 : vector<8x128xf32>
    %549 = arith.addf %545, %548 : vector<8x128xf32>
    %c5_270 = arith.constant 5 : index
    %c10_271 = arith.constant 10 : index
    %550 = memref.load %arg4[%c5_270, %c10_271] : memref<8x12xf32, #tpu.memory_space<smem>>
    %551 = vector.broadcast %550 : f32 to vector<8x128xf32>
    %552 = arith.mulf %227, %551 : vector<8x128xf32>
    %553 = arith.addf %549, %552 : vector<8x128xf32>
    %c5_272 = arith.constant 5 : index
    %c11_273 = arith.constant 11 : index
    %554 = memref.load %arg4[%c5_272, %c11_273] : memref<8x12xf32, #tpu.memory_space<smem>>
    %555 = vector.broadcast %554 : f32 to vector<8x128xf32>
    %556 = arith.mulf %247, %555 : vector<8x128xf32>
    %557 = arith.addf %553, %556 : vector<8x128xf32>
    %cst_274 = arith.constant 0.000000e+00 : f32
    %558 = vector.broadcast %cst_274 : f32 to vector<8x128xf32>
    %559 = arith.maximumf %557, %558 : vector<8x128xf32>
    %c6_275 = arith.constant 6 : index
    %c0_276 = arith.constant 0 : index
    %560 = memref.load %arg4[%c6_275, %c0_276] : memref<8x12xf32, #tpu.memory_space<smem>>
    %561 = vector.broadcast %560 : f32 to vector<8x128xf32>
    %562 = arith.mulf %27, %561 : vector<8x128xf32>
    %c6_277 = arith.constant 6 : index
    %563 = memref.load %arg5[%c6_277] : memref<8xf32, #tpu.memory_space<smem>>
    %564 = vector.broadcast %563 : f32 to vector<8x128xf32>
    %565 = arith.addf %562, %564 : vector<8x128xf32>
    %c6_278 = arith.constant 6 : index
    %c1_279 = arith.constant 1 : index
    %566 = memref.load %arg4[%c6_278, %c1_279] : memref<8x12xf32, #tpu.memory_space<smem>>
    %567 = vector.broadcast %566 : f32 to vector<8x128xf32>
    %568 = arith.mulf %47, %567 : vector<8x128xf32>
    %569 = arith.addf %565, %568 : vector<8x128xf32>
    %c6_280 = arith.constant 6 : index
    %c2_281 = arith.constant 2 : index
    %570 = memref.load %arg4[%c6_280, %c2_281] : memref<8x12xf32, #tpu.memory_space<smem>>
    %571 = vector.broadcast %570 : f32 to vector<8x128xf32>
    %572 = arith.mulf %67, %571 : vector<8x128xf32>
    %573 = arith.addf %569, %572 : vector<8x128xf32>
    %c6_282 = arith.constant 6 : index
    %c3_283 = arith.constant 3 : index
    %574 = memref.load %arg4[%c6_282, %c3_283] : memref<8x12xf32, #tpu.memory_space<smem>>
    %575 = vector.broadcast %574 : f32 to vector<8x128xf32>
    %576 = arith.mulf %87, %575 : vector<8x128xf32>
    %577 = arith.addf %573, %576 : vector<8x128xf32>
    %c6_284 = arith.constant 6 : index
    %c4_285 = arith.constant 4 : index
    %578 = memref.load %arg4[%c6_284, %c4_285] : memref<8x12xf32, #tpu.memory_space<smem>>
    %579 = vector.broadcast %578 : f32 to vector<8x128xf32>
    %580 = arith.mulf %107, %579 : vector<8x128xf32>
    %581 = arith.addf %577, %580 : vector<8x128xf32>
    %c6_286 = arith.constant 6 : index
    %c5_287 = arith.constant 5 : index
    %582 = memref.load %arg4[%c6_286, %c5_287] : memref<8x12xf32, #tpu.memory_space<smem>>
    %583 = vector.broadcast %582 : f32 to vector<8x128xf32>
    %584 = arith.mulf %127, %583 : vector<8x128xf32>
    %585 = arith.addf %581, %584 : vector<8x128xf32>
    %c6_288 = arith.constant 6 : index
    %c6_289 = arith.constant 6 : index
    %586 = memref.load %arg4[%c6_288, %c6_289] : memref<8x12xf32, #tpu.memory_space<smem>>
    %587 = vector.broadcast %586 : f32 to vector<8x128xf32>
    %588 = arith.mulf %147, %587 : vector<8x128xf32>
    %589 = arith.addf %585, %588 : vector<8x128xf32>
    %c6_290 = arith.constant 6 : index
    %c7_291 = arith.constant 7 : index
    %590 = memref.load %arg4[%c6_290, %c7_291] : memref<8x12xf32, #tpu.memory_space<smem>>
    %591 = vector.broadcast %590 : f32 to vector<8x128xf32>
    %592 = arith.mulf %167, %591 : vector<8x128xf32>
    %593 = arith.addf %589, %592 : vector<8x128xf32>
    %c6_292 = arith.constant 6 : index
    %c8_293 = arith.constant 8 : index
    %594 = memref.load %arg4[%c6_292, %c8_293] : memref<8x12xf32, #tpu.memory_space<smem>>
    %595 = vector.broadcast %594 : f32 to vector<8x128xf32>
    %596 = arith.mulf %187, %595 : vector<8x128xf32>
    %597 = arith.addf %593, %596 : vector<8x128xf32>
    %c6_294 = arith.constant 6 : index
    %c9_295 = arith.constant 9 : index
    %598 = memref.load %arg4[%c6_294, %c9_295] : memref<8x12xf32, #tpu.memory_space<smem>>
    %599 = vector.broadcast %598 : f32 to vector<8x128xf32>
    %600 = arith.mulf %207, %599 : vector<8x128xf32>
    %601 = arith.addf %597, %600 : vector<8x128xf32>
    %c6_296 = arith.constant 6 : index
    %c10_297 = arith.constant 10 : index
    %602 = memref.load %arg4[%c6_296, %c10_297] : memref<8x12xf32, #tpu.memory_space<smem>>
    %603 = vector.broadcast %602 : f32 to vector<8x128xf32>
    %604 = arith.mulf %227, %603 : vector<8x128xf32>
    %605 = arith.addf %601, %604 : vector<8x128xf32>
    %c6_298 = arith.constant 6 : index
    %c11_299 = arith.constant 11 : index
    %606 = memref.load %arg4[%c6_298, %c11_299] : memref<8x12xf32, #tpu.memory_space<smem>>
    %607 = vector.broadcast %606 : f32 to vector<8x128xf32>
    %608 = arith.mulf %247, %607 : vector<8x128xf32>
    %609 = arith.addf %605, %608 : vector<8x128xf32>
    %cst_300 = arith.constant 0.000000e+00 : f32
    %610 = vector.broadcast %cst_300 : f32 to vector<8x128xf32>
    %611 = arith.maximumf %609, %610 : vector<8x128xf32>
    %c7_301 = arith.constant 7 : index
    %c0_302 = arith.constant 0 : index
    %612 = memref.load %arg4[%c7_301, %c0_302] : memref<8x12xf32, #tpu.memory_space<smem>>
    %613 = vector.broadcast %612 : f32 to vector<8x128xf32>
    %614 = arith.mulf %27, %613 : vector<8x128xf32>
    %c7_303 = arith.constant 7 : index
    %615 = memref.load %arg5[%c7_303] : memref<8xf32, #tpu.memory_space<smem>>
    %616 = vector.broadcast %615 : f32 to vector<8x128xf32>
    %617 = arith.addf %614, %616 : vector<8x128xf32>
    %c7_304 = arith.constant 7 : index
    %c1_305 = arith.constant 1 : index
    %618 = memref.load %arg4[%c7_304, %c1_305] : memref<8x12xf32, #tpu.memory_space<smem>>
    %619 = vector.broadcast %618 : f32 to vector<8x128xf32>
    %620 = arith.mulf %47, %619 : vector<8x128xf32>
    %621 = arith.addf %617, %620 : vector<8x128xf32>
    %c7_306 = arith.constant 7 : index
    %c2_307 = arith.constant 2 : index
    %622 = memref.load %arg4[%c7_306, %c2_307] : memref<8x12xf32, #tpu.memory_space<smem>>
    %623 = vector.broadcast %622 : f32 to vector<8x128xf32>
    %624 = arith.mulf %67, %623 : vector<8x128xf32>
    %625 = arith.addf %621, %624 : vector<8x128xf32>
    %c7_308 = arith.constant 7 : index
    %c3_309 = arith.constant 3 : index
    %626 = memref.load %arg4[%c7_308, %c3_309] : memref<8x12xf32, #tpu.memory_space<smem>>
    %627 = vector.broadcast %626 : f32 to vector<8x128xf32>
    %628 = arith.mulf %87, %627 : vector<8x128xf32>
    %629 = arith.addf %625, %628 : vector<8x128xf32>
    %c7_310 = arith.constant 7 : index
    %c4_311 = arith.constant 4 : index
    %630 = memref.load %arg4[%c7_310, %c4_311] : memref<8x12xf32, #tpu.memory_space<smem>>
    %631 = vector.broadcast %630 : f32 to vector<8x128xf32>
    %632 = arith.mulf %107, %631 : vector<8x128xf32>
    %633 = arith.addf %629, %632 : vector<8x128xf32>
    %c7_312 = arith.constant 7 : index
    %c5_313 = arith.constant 5 : index
    %634 = memref.load %arg4[%c7_312, %c5_313] : memref<8x12xf32, #tpu.memory_space<smem>>
    %635 = vector.broadcast %634 : f32 to vector<8x128xf32>
    %636 = arith.mulf %127, %635 : vector<8x128xf32>
    %637 = arith.addf %633, %636 : vector<8x128xf32>
    %c7_314 = arith.constant 7 : index
    %c6_315 = arith.constant 6 : index
    %638 = memref.load %arg4[%c7_314, %c6_315] : memref<8x12xf32, #tpu.memory_space<smem>>
    %639 = vector.broadcast %638 : f32 to vector<8x128xf32>
    %640 = arith.mulf %147, %639 : vector<8x128xf32>
    %641 = arith.addf %637, %640 : vector<8x128xf32>
    %c7_316 = arith.constant 7 : index
    %c7_317 = arith.constant 7 : index
    %642 = memref.load %arg4[%c7_316, %c7_317] : memref<8x12xf32, #tpu.memory_space<smem>>
    %643 = vector.broadcast %642 : f32 to vector<8x128xf32>
    %644 = arith.mulf %167, %643 : vector<8x128xf32>
    %645 = arith.addf %641, %644 : vector<8x128xf32>
    %c7_318 = arith.constant 7 : index
    %c8_319 = arith.constant 8 : index
    %646 = memref.load %arg4[%c7_318, %c8_319] : memref<8x12xf32, #tpu.memory_space<smem>>
    %647 = vector.broadcast %646 : f32 to vector<8x128xf32>
    %648 = arith.mulf %187, %647 : vector<8x128xf32>
    %649 = arith.addf %645, %648 : vector<8x128xf32>
    %c7_320 = arith.constant 7 : index
    %c9_321 = arith.constant 9 : index
    %650 = memref.load %arg4[%c7_320, %c9_321] : memref<8x12xf32, #tpu.memory_space<smem>>
    %651 = vector.broadcast %650 : f32 to vector<8x128xf32>
    %652 = arith.mulf %207, %651 : vector<8x128xf32>
    %653 = arith.addf %649, %652 : vector<8x128xf32>
    %c7_322 = arith.constant 7 : index
    %c10_323 = arith.constant 10 : index
    %654 = memref.load %arg4[%c7_322, %c10_323] : memref<8x12xf32, #tpu.memory_space<smem>>
    %655 = vector.broadcast %654 : f32 to vector<8x128xf32>
    %656 = arith.mulf %227, %655 : vector<8x128xf32>
    %657 = arith.addf %653, %656 : vector<8x128xf32>
    %c7_324 = arith.constant 7 : index
    %c11_325 = arith.constant 11 : index
    %658 = memref.load %arg4[%c7_324, %c11_325] : memref<8x12xf32, #tpu.memory_space<smem>>
    %659 = vector.broadcast %658 : f32 to vector<8x128xf32>
    %660 = arith.mulf %247, %659 : vector<8x128xf32>
    %661 = arith.addf %657, %660 : vector<8x128xf32>
    %cst_326 = arith.constant 0.000000e+00 : f32
    %662 = vector.broadcast %cst_326 : f32 to vector<8x128xf32>
    %663 = arith.maximumf %661, %662 : vector<8x128xf32>
    %c0_327 = arith.constant 0 : index
    %c0_328 = arith.constant 0 : index
    %664 = memref.load %arg6[%c0_327, %c0_328] : memref<1x8xf32, #tpu.memory_space<smem>>
    %665 = vector.broadcast %664 : f32 to vector<8x128xf32>
    %666 = arith.mulf %299, %665 : vector<8x128xf32>
    %c0_329 = arith.constant 0 : index
    %667 = memref.load %arg7[%c0_329] : memref<1xf32, #tpu.memory_space<smem>>
    %668 = vector.broadcast %667 : f32 to vector<8x128xf32>
    %669 = arith.addf %666, %668 : vector<8x128xf32>
    %c0_330 = arith.constant 0 : index
    %c1_331 = arith.constant 1 : index
    %670 = memref.load %arg6[%c0_330, %c1_331] : memref<1x8xf32, #tpu.memory_space<smem>>
    %671 = vector.broadcast %670 : f32 to vector<8x128xf32>
    %672 = arith.mulf %351, %671 : vector<8x128xf32>
    %673 = arith.addf %669, %672 : vector<8x128xf32>
    %c0_332 = arith.constant 0 : index
    %c2_333 = arith.constant 2 : index
    %674 = memref.load %arg6[%c0_332, %c2_333] : memref<1x8xf32, #tpu.memory_space<smem>>
    %675 = vector.broadcast %674 : f32 to vector<8x128xf32>
    %676 = arith.mulf %403, %675 : vector<8x128xf32>
    %677 = arith.addf %673, %676 : vector<8x128xf32>
    %c0_334 = arith.constant 0 : index
    %c3_335 = arith.constant 3 : index
    %678 = memref.load %arg6[%c0_334, %c3_335] : memref<1x8xf32, #tpu.memory_space<smem>>
    %679 = vector.broadcast %678 : f32 to vector<8x128xf32>
    %680 = arith.mulf %455, %679 : vector<8x128xf32>
    %681 = arith.addf %677, %680 : vector<8x128xf32>
    %c0_336 = arith.constant 0 : index
    %c4_337 = arith.constant 4 : index
    %682 = memref.load %arg6[%c0_336, %c4_337] : memref<1x8xf32, #tpu.memory_space<smem>>
    %683 = vector.broadcast %682 : f32 to vector<8x128xf32>
    %684 = arith.mulf %507, %683 : vector<8x128xf32>
    %685 = arith.addf %681, %684 : vector<8x128xf32>
    %c0_338 = arith.constant 0 : index
    %c5_339 = arith.constant 5 : index
    %686 = memref.load %arg6[%c0_338, %c5_339] : memref<1x8xf32, #tpu.memory_space<smem>>
    %687 = vector.broadcast %686 : f32 to vector<8x128xf32>
    %688 = arith.mulf %559, %687 : vector<8x128xf32>
    %689 = arith.addf %685, %688 : vector<8x128xf32>
    %c0_340 = arith.constant 0 : index
    %c6_341 = arith.constant 6 : index
    %690 = memref.load %arg6[%c0_340, %c6_341] : memref<1x8xf32, #tpu.memory_space<smem>>
    %691 = vector.broadcast %690 : f32 to vector<8x128xf32>
    %692 = arith.mulf %611, %691 : vector<8x128xf32>
    %693 = arith.addf %689, %692 : vector<8x128xf32>
    %c0_342 = arith.constant 0 : index
    %c7_343 = arith.constant 7 : index
    %694 = memref.load %arg6[%c0_342, %c7_343] : memref<1x8xf32, #tpu.memory_space<smem>>
    %695 = vector.broadcast %694 : f32 to vector<8x128xf32>
    %696 = arith.mulf %663, %695 : vector<8x128xf32>
    %697 = arith.addf %693, %696 : vector<8x128xf32>
    %698 = arith.negf %697 : vector<8x128xf32>
    %699 = math.exp %698 : vector<8x128xf32>
    %cst_344 = arith.constant 1.000000e+00 : f32
    %700 = vector.broadcast %cst_344 : f32 to vector<8x128xf32>
    %701 = arith.addf %700, %699 : vector<8x128xf32>
    %702 = arith.divf %700, %701 : vector<8x128xf32>
    %c0_345 = arith.constant 0 : index
    %c0_346 = arith.constant 0 : index
    %703 = vector.load %arg8[%c0_345, %c0_346] : memref<8x128xf32, #tpu.memory_space<vmem>>, vector<8x128xf32>
    tpu.vector_store %arg8[%c0_345, %c0_346], %702 {strides = array<i32>} : memref<8x128xf32, #tpu.memory_space<vmem>>, vector<8x128xf32>,
    return
  }
  func.func @transform_0(%arg0: i32) -> (i32, i32, i32) {
    %c0_i32 = arith.constant 0 : i32
    %c0_i32_0 = arith.constant 0 : i32
    %c0_i32_1 = arith.constant 0 : i32
    return %c0_i32, %arg0, %c0_i32_0 : i32, i32, i32
  }
  func.func @transform_1(%arg0: i32) -> (i32, i32) {
    %c0_i32 = arith.constant 0 : i32
    %c0_i32_0 = arith.constant 0 : i32
    %c0_i32_1 = arith.constant 0 : i32
    return %c0_i32, %c0_i32_0 : i32, i32
  }
  func.func @transform_2(%arg0: i32) -> i32 {
    %c0_i32 = arith.constant 0 : i32
    %c0_i32_0 = arith.constant 0 : i32
    return %c0_i32 : i32
  }
  func.func @transform_3(%arg0: i32) -> (i32, i32) {
    %c0_i32 = arith.constant 0 : i32
    %c0_i32_0 = arith.constant 0 : i32
    %c0_i32_1 = arith.constant 0 : i32
    return %c0_i32, %c0_i32_0 : i32, i32
  }
  func.func @transform_4(%arg0: i32) -> i32 {
    %c0_i32 = arith.constant 0 : i32
    %c0_i32_0 = arith.constant 0 : i32
    return %c0_i32 : i32
  }
  func.func @transform_5(%arg0: i32) -> (i32, i32) {
    %c0_i32 = arith.constant 0 : i32
    %c0_i32_0 = arith.constant 0 : i32
    %c0_i32_1 = arith.constant 0 : i32
    return %c0_i32, %c0_i32_0 : i32, i32
  }
  func.func @transform_6(%arg0: i32) -> i32 {
    %c0_i32 = arith.constant 0 : i32
    %c0_i32_0 = arith.constant 0 : i32
    return %c0_i32 : i32
  }
  func.func @transform_7(%arg0: i32) -> (i32, i32) {
    %c0_i32 = arith.constant 0 : i32
    %c0_i32_0 = arith.constant 0 : i32
    return %arg0, %c0_i32 : i32, i32
  }
}

</mosaic_0001>

<bundles_post_ra>
// kernel: tpu_custom_call.1
= control target key start
LH: loop header
LB: loop body
LE: loop exit
PB: predicated region body
PF: predicated region fallthrough
CT: control target
= control target key end

     0   :  { %13 = vsyncpa [#allocation4], 0  ;;  %s1901_s0 = inlined_call_operand.hbm [shape: f32[4,8,128], index: 0, kind: input, shape index: {}]   ;;  %s1902_s1 = inlined_call_operand.vmem [shape: f32[12,4], index: 1, kind: input, shape index: {}]   ;;  %s1903_s2 = inlined_call_operand.vmem [shape: f32[12], index: 2, kind: input, shape index: {}]   ;;  %s1904_s3 = inlined_call_operand.vmem [shape: f32[8,12], index: 3, kind: input, shape index: {}]   ;;  %s1905_s4 = inlined_call_operand.vmem [shape: f32[8], index: 4, kind: input, shape index: {}]   ;;  %s1906_s5 = inlined_call_operand.vmem [shape: f32[1,8], index: 5, kind: input, shape index: {}]   ;;  %s1907_s6 = inlined_call_operand.<no memory space> [shape: f32[1], index: 6, kind: input, shape index: {}]   ;;  %s1908_s7 = inlined_call_operand.hbm [shape: f32[8,128], index: 7, kind: output, shape index: {}]  }
   0x1   :  { %14 = vsyncpa [#allocation6], 0 }
   0x2   :  { %15 = vsyncpa [#allocation9], 0 }
   0x3   :  { %16 = vsyncpa [#allocation12], 0  ;;  %s48_s26 = sshll.u32 %s1903_s2, 4  ;;  %s49_s26 = int_to_ptr.vmem [resolvable:$true] %s48_s26 }
   0x4   :  { %17 = vsyncpa [#allocation5], 0  ;;  %s68_s29 = sshll.u32 %s1905_s4, 4  ;;  %s986_s30 = scalar_lea.vmem %s49_s26, 16  ;;  %s69_s29 = int_to_ptr.vmem [resolvable:$true] %s68_s29 }
   0x5   :  { %p987_p0 = scmp.ne.s32.totalorder %s49_s26, %s986_s30  ;;  %p991_p1 = scmp.lt.s32.totalorder %s49_s26, %s49_s26 }
   0x6   :  { %p992_p2 = scmp.lt.s32.totalorder %s986_s30, %s986_s30 }
   0x8   :  { %p993_p3 = por %p992_p2, %p991_p1 }
   0xa   :  { %p994_p4 = pnand %p993_p3, %p987_p0 }
   0xc   :  { %997 = shalt.err (!%p994_p4)
}
   0xd   :  { %s1100_s8 = smov [#allocation8]   ;;  %s998_s9 = scalar_lea.vmem %s69_s29, 16 }
   0xe   :  { %51 = dma.vmem_to_smem %s49_s26, 16, %s1100_s8, [#allocation9]  }
   0xf   :  { %p999_p5 = scmp.ne.s32.totalorder %s69_s29, %s998_s9  ;;  %p1003_p6 = scmp.lt.s32.totalorder %s69_s29, %s69_s29 }
  0x10   :  { %p1004_p7 = scmp.lt.s32.totalorder %s998_s9, %s998_s9 }
  0x12   :  { %p1005_p8 = por %p1004_p7, %p1003_p6 }
  0x14   :  { %p1006_p9 = pnand %p1005_p8, %p999_p5 }
  0x16   :  { %1009 = shalt.err (!%p1006_p9)
}
  0x17   :  { %s1101_s2 = smov [#allocation11]   ;;  %s1102_s4 = smov [#allocation3]  }
  0x18   :  { %71 = dma.vmem_to_smem %s69_s29, 16, %s1101_s2, [#allocation12]  }
  0x19   :  { %s23_s10 = sshll.u32 %s1102_s4, 4  ;;  %s35_s13 = sshll.u32 %s1902_s1, 4  ;;  %s24_s10 = int_to_ptr.vmem [resolvable:$true] %s23_s10  ;;  %s36_s13 = int_to_ptr.vmem [resolvable:$true] %s35_s13 }
  0x1a   :  { %s1010_s16 = scalar_lea.hbm %s1901_s0, 512 }
  0x1b   :  { %p1011_p10 = scmp.ne.s32.totalorder %s1901_s0, %s1010_s16  ;;  %p1014_p11 = scmp.lt.u32.totalorder %s1010_s16, %s1901_s0 }
  0x1d   :  { %p1016_p12 = pnand %p1014_p11, %p1011_p10 }
  0x1f   :  { %1019 = shalt.err (!%p1016_p12)
}
  0x20   :  { %s1020_s21 = scalar_lea.vmem %s24_s10, 512  ;;  %p1025_p0 = scmp.lt.s32.totalorder %s24_s10, %s24_s10 }
  0x21   :  { %p1021_p13 = scmp.ne.s32.totalorder %s24_s10, %s1020_s21  ;;  %p1026_p1 = scmp.lt.s32.totalorder %s1020_s21, %s1020_s21 }
  0x23   :  { %p1027_p2 = por %p1026_p1, %p1025_p0 }
  0x25   :  { %p1028_p3 = pnand %p1027_p2, %p1021_p13 }
  0x27   :  { %1031 = shalt.err (!%p1028_p3)
}
  0x28   :  { %s1103_s1 = smov 128   ;;  %s1104_s22 = smov 8  }
  0x29   :  { %29 = dma.hbm_to_vmem [thread:$0]  %s1901_s0, 512, %s24_s10, [#allocation4], %s1103_s1, %s1103_s1, %s1104_s22  }
  0x2a   :  { %s1032_s25 = scalar_lea.vmem %s36_s13, 256  ;;  %p1037_p5 = scmp.lt.s32.totalorder %s36_s13, %s36_s13 }
  0x2b   :  { %p1033_p4 = scmp.ne.s32.totalorder %s36_s13, %s1032_s25  ;;  %p1038_p6 = scmp.lt.s32.totalorder %s1032_s25, %s1032_s25 }
  0x2d   :  { %p1039_p7 = por %p1038_p6, %p1037_p5 }
  0x2f   :  { %p1040_p8 = pnand %p1039_p7, %p1033_p4 }
  0x31   :  { %1043 = shalt.err (!%p1040_p8)
}
  0x32   :  { %s1105_s26 = smov [#allocation7]   ;;  %s58_s29 = sshll.u32 %s1904_s3, 4  ;;  %s59_s29 = int_to_ptr.vmem [resolvable:$true] %s58_s29 }
  0x33   :  { %41 = dma.vmem_to_smem %s36_s13, 256, %s1105_s26, [#allocation6], %s1103_s1, %s1103_s1, %s1104_s22  }
  0x34   :  { %s78_s9 = sshll.u32 %s1906_s5, 4  ;;  %s1044_s0 = scalar_lea.vmem %s59_s29, 128  ;;  %s79_s9 = int_to_ptr.vmem [resolvable:$true] %s78_s9 }
  0x35   :  { %p1045_p9 = scmp.ne.s32.totalorder %s59_s29, %s1044_s0  ;;  %p1049_p10 = scmp.lt.s32.totalorder %s59_s29, %s59_s29 }
  0x36   :  { %p1050_p11 = scmp.lt.s32.totalorder %s1044_s0, %s1044_s0 }
  0x38   :  { %p1051_p12 = por %p1050_p11, %p1049_p10 }
  0x3a   :  { %p1052_p13 = pnand %p1051_p12, %p1045_p9 }
  0x3c   :  { %1055 = shalt.err (!%p1052_p13)
}
  0x3d   :  { %s1106_s2 = smov [#allocation10]   ;;  %s1056_s4 = scalar_lea.vmem %s79_s9, 16 }
  0x3e   :  { %61 = dma.vmem_to_smem %s59_s29, 128, %s1106_s2, [#allocation9]  }
  0x3f   :  { %p1057_p0 = scmp.ne.s32.totalorder %s79_s9, %s1056_s4  ;;  %p1061_p1 = scmp.lt.s32.totalorder %s79_s9, %s79_s9 }
  0x40   :  { %p1062_p2 = scmp.lt.s32.totalorder %s1056_s4, %s1056_s4 }
  0x42   :  { %p1063_p3 = por %p1062_p2, %p1061_p1 }
  0x44   :  { %p1064_p4 = pnand %p1063_p3, %p1057_p0 }
  0x46   :  { %1067 = shalt.err (!%p1064_p4)
}
  0x47   :  { %s1107_s3 = smov [#allocation13]  }
  0x48   :  { %81 = dma.vmem_to_smem %s79_s9, 16, %s1107_s3, [#allocation12]  }
  0x49   :  { %1090 = dma.done.wait [#allocation4], 512  }
  0x4a   :  { %1091 = vsyncadd [#allocation4], 4294966784 }
  0x4b   :  { %1092 = dma.done.wait [#allocation6], 256  }
  0x4c   :  { %1093 = vsyncadd [#allocation6], 4294967040 }
  0x4d   :  { %1094 = dma.done.wait [#allocation9], 144  }
  0x4e   :  { %1095 = vsyncadd [#allocation9], 4294967152 }
  0x4f   :  { %1096 = dma.done.wait [#allocation12], 32  }
  0x50   :  { %1097 = vsyncadd [#allocation12], 4294967264 }
  0x51   :  { %102 = sfence }
  0x52   :  { %s110_s5 = sld [smem:[#allocation7]]  ;;  %s805_s11 = sld [smem:[#allocation7 + $0x1]]  ;;  %v1180_v0 = vld [vmem:[#allocation3] sm:$0xff]  ;;  %v1186_v1 = vld [vmem:[#allocation3 + $0x8] sm:$0xff]  ;;  %v1192_v2 = vld [vmem:[#allocation3 + $0x10] sm:$0xff] }
  0x53   :  { %s113_s10 = sld [smem:[#allocation8]]  ;;  %s806_s12 = sld [smem:[#allocation7 + $0x2]]  ;;  %v1201_v7 = vld [vmem:[#allocation3 + $0x18] sm:$0xff] }
  0x54   :  { %s1176_s13 = sld [smem:[#allocation7 + $0x3]]  ;;  %s808_s14 = sld [smem:[#allocation7 + $0x80]] }
  0x55   :  { %s1178_s15 = sld [smem:[#allocation8 + $0x1]]  ;;  %s1184_s17 = sld [smem:[#allocation7 + $0x82]] }
  0x56   :  { %s1182_s16 = sld [smem:[#allocation7 + $0x81]]  ;;  %s1188_s18 = sld [smem:[#allocation7 + $0x83]] }
  0x57   :  { %s1190_s19 = sld [smem:[#allocation7 + $0x100]]  ;;  %s1194_s20 = sld [smem:[#allocation8 + $0x2]] }
  0x58   :  { %v111_v3 = vstv %s110_s5  ;;  %s1196_s21 = sld [smem:[#allocation7 + $0x101]]  ;;  %v117_v6 = vstv %s805_s11  ;;  %s1199_s1 = sld [smem:[#allocation7 + $0x102]] }
  0x59   :  { %v112_v4 = vmul.f32 %v111_v3, %v1180_v0  ;;  %v114_v5 = vstv %s113_s10  ;;  %v118_v8 = vmul.f32 %v117_v6, %v1186_v1  ;;  %v121_v9 = vstv %s806_s12  ;;  %s1205_s22 = sld [smem:[#allocation7 + $0x180]]  ;;  %s1207_s23 = sld [smem:[#allocation8 + $0x3]] }
  0x5a   :  { %v125_v10 = vstv %s1176_s13  ;;  %v122_v12 = vmul.f32 %v121_v9, %v1192_v2  ;;  %v130_v13 = vstv %s808_s14  ;;  %s1210_s24 = sld [smem:[#allocation7 + $0x103]]  ;;  %s1212_s25 = sld [smem:[#allocation7 + $0x181]] }
  0x5b   :  { %v115_v11 = vadd.f32 %v114_v5, %v112_v4  ;;  %v131_v14 = vmul.f32 %v130_v13, %v1180_v0  ;;  %v133_v15 = vstv %s1178_s15  ;;  %v140_v17 = vstv %s1184_s17  ;;  %s1218_s26 = sld [smem:[#allocation7 + $0x182]]  ;;  %s1220_s27 = sld [smem:[#allocation7 + $0x183]] }
  0x5c   :  { %v136_v16 = vstv %s1182_s16  ;;  %v126_v19 = vmul.f32 %v125_v10, %v1201_v7  ;;  %v144_v21 = vstv %s1188_s18  ;;  %s1225_s28 = sld [smem:[#allocation7 + $0x200]]  ;;  %s1227_s29 = sld [smem:[#allocation8 + $0x4]]  ;;  %v141_v23 = vmul.f32 %v140_v17, %v1192_v2 }
  0x5d   :  { %v119_v18 = vadd.f32 %v118_v8, %v115_v11  ;;  %v137_v20 = vmul.f32 %v136_v16, %v1186_v1  ;;  %v134_v22 = vadd.f32 %v133_v15, %v131_v14  ;;  %v149_v24 = vstv %s1190_s19  ;;  %s1232_s30 = sld [smem:[#allocation7 + $0x201]]  ;;  %s1236_s8 = sld [smem:[#allocation7 + $0x202]] }
  0x5e   :  { %v152_v25 = vstv %s1194_s20  ;;  %v150_v27 = vmul.f32 %v149_v24, %v1180_v0  ;;  %v155_v28 = vstv %s1196_s21  ;;  %v145_v30 = vmul.f32 %v144_v21, %v1201_v7  ;;  %s1241_s9 = sld [smem:[#allocation7 + $0x203]]  ;;  %s1243_s0 = sld [smem:[#allocation7 + $0x280]] }
  0x5f   :  { %v123_v26 = vadd.f32 %v122_v12, %v119_v18  ;;  %v138_v29 = vadd.f32 %v137_v20, %v134_v22  ;;  %v156_v31 = vmul.f32 %v155_v28, %v1186_v1  ;;  %v159_v32 = vstv %s1199_s1  ;;  %s1246_s2 = sld [smem:[#allocation8 + $0x5]]  ;;  %s1248_s4 = sld [smem:[#allocation7 + $0x281]] }
  0x60   :  { %v153_v34 = vadd.f32 %v152_v25, %v150_v27  ;;  %v168_v35 = vstv %s1205_s22  ;;  %v171_v38 = vstv %s1207_s23  ;;  %v174_v39 = vstv %s1212_s25  ;;  %s1253_s3 = sld [smem:[#allocation7 + $0x282]]  ;;  %s1258_s5 = sld [smem:[#allocation7 + $0x283]] }
  0x61   :  { %v127_v33 = vadd.f32 %v126_v19, %v123_v26  ;;  %v142_v36 = vadd.f32 %v141_v23, %v138_v29  ;;  %v169_v37 = vmul.f32 %v168_v35, %v1180_v0  ;;  %v160_v40 = vmul.f32 %v159_v32, %v1192_v2  ;;  %s1260_s10 = sld [smem:[#allocation7 + $0x300]]  ;;  %s1263_s11 = sld [smem:[#allocation8 + $0x6]] }
  0x62   :  { %v163_v41 = vstv %s1210_s24  ;;  %v175_v42 = vmul.f32 %v174_v39, %v1186_v1  ;;  %v157_v44 = vadd.f32 %v156_v31, %v153_v34  ;;  %v178_v46 = vstv %s1218_s26  ;;  %s1268_s12 = sld [smem:[#allocation7 + $0x301]]  ;;  %s1270_s13 = sld [smem:[#allocation7 + $0x302]] }
  0x63   :  { %v146_v43 = vadd.f32 %v145_v30, %v142_v36  ;;  %v172_v45 = vadd.f32 %v171_v38, %v169_v37  ;;  %v182_v47 = vstv %s1220_s27  ;;  %v187_v48 = vstv %s1225_s28  ;;  %s1280_s14 = sld [smem:[#allocation7 + $0x380]]  ;;  %s1282_s15 = sld [smem:[#allocation8 + $0x7]] }
  0x64   :  { %v190_v49 = vstv %s1227_s29  ;;  %v1272_v50 = vmax.f32 %v127_v33, 0.0  ;;  %v164_v51 = vmul.f32 %v163_v41, %v1201_v7  ;;  %v188_v52 = vmul.f32 %v187_v48, %v1180_v0  ;;  %s1287_s16 = sld [smem:[#allocation7 + $0x303]]  ;;  %s1293_s17 = sld [smem:[#allocation7 + $0x381]] }
  0x65   :  { %v193_v53 = vstv %s1232_s30  ;;  %v176_v54 = vadd.f32 %v175_v42, %v172_v45  ;;  %v179_v55 = vmul.f32 %v178_v46, %v1192_v2  ;;  %v197_v57 = vstv %s1236_s8  ;;  %s1295_s18 = sld [smem:[#allocation7 + $0x382]]  ;;  %s1300_s19 = sld [smem:[#allocation7 + $0x383]] }
  0x66   :  { %v194_v56 = vmul.f32 %v193_v53, %v1186_v1  ;;  %v1284_v58 = vmax.f32 %v146_v43, 0.0  ;;  %v161_v59 = vadd.f32 %v160_v40, %v157_v44  ;;  %v183_v60 = vmul.f32 %v182_v47, %v1201_v7  ;;  %s1305_s20 = sld [smem:[#allocation7 + $0x400]]  ;;  %s1311_s1 = sld [smem:[#allocation7 + $0x401]] }
  0x67   :  { %v191_v61 = vadd.f32 %v190_v49, %v188_v52  ;;  %v201_v62 = vstv %s1241_s9  ;;  %v206_v63 = vstv %s1243_s0  ;;  %v209_v3 = vstv %s1246_s2  ;;  %s1307_s21 = sld [smem:[#allocation8 + $0x8]]  ;;  %s1317_s22 = sld [smem:[#allocation7 + $0x402]] }
  0x68   :  { %v212_v4 = vstv %s1248_s4  ;;  %v198_v6 = vmul.f32 %v197_v57, %v1192_v2  ;;  %v207_v8 = vmul.f32 %v206_v63, %v1180_v0  ;;  %v180_v10 = vadd.f32 %v179_v55, %v176_v54  ;;  %s1321_s23 = sld [smem:[#allocation7 + $0x403]]  ;;  %s1323_s24 = sld [smem:[#allocation7 + $0x480]] }
  0x69   :  { %v195_v5 = vadd.f32 %v194_v56, %v191_v61  ;;  %v213_v9 = vmul.f32 %v212_v4, %v1186_v1  ;;  %v216_v11 = vstv %s1253_s3  ;;  %v220_v12 = vstv %s1258_s5  ;;  %s1327_s25 = sld [smem:[#allocation8 + $0x9]]  ;;  %s1338_s27 = sld [smem:[#allocation7 + $0x482]] }
  0x6a   :  { %v225_v13 = vstv %s1260_s10  ;;  %v165_v14 = vadd.f32 %v164_v51, %v161_v59  ;;  %v210_v15 = vadd.f32 %v209_v3, %v207_v8  ;;  %v217_v16 = vmul.f32 %v216_v11, %v1192_v2  ;;  %s1329_s26 = sld [smem:[#allocation7 + $0x481]]  ;;  %s1340_s28 = sld [smem:[#allocation7 + $0x500]] }
  0x6b   :  { %v228_v17 = vstv %s1263_s11  ;;  %v202_v18 = vmul.f32 %v201_v62, %v1201_v7  ;;  %v226_v19 = vmul.f32 %v225_v13, %v1180_v0  ;;  %v231_v20 = vstv %s1268_s12  ;;  %s1343_s29 = sld [smem:[#allocation7 + $0x483]]  ;;  %s1345_s30 = sld [smem:[#allocation8 + $0xa]] }
  0x6c   :  { %v235_v21 = vstv %s1270_s13  ;;  %v199_v22 = vadd.f32 %v198_v6, %v195_v5  ;;  %v214_v23 = vadd.f32 %v213_v9, %v210_v15  ;;  %v221_v24 = vmul.f32 %v220_v12, %v1201_v7  ;;  %s1352_s8 = sld [smem:[#allocation7 + $0x501]]  ;;  %s1354_s9 = sld [smem:[#allocation7 + $0x502]] }
  0x6d   :  { %v232_v25 = vmul.f32 %v231_v20, %v1186_v1  ;;  %v184_v26 = vadd.f32 %v183_v60, %v180_v10  ;;  %v229_v27 = vadd.f32 %v228_v17, %v226_v19  ;;  %v244_v28 = vstv %s1280_s14  ;;  %s1360_s0 = sld [smem:[#allocation7 + $0x503]]  ;;  %s1364_s2 = sld [smem:[#allocation7 + $0x580]] }
  0x6e   :  { %v247_v29 = vstv %s1282_s15  ;;  %v1331_v30 = vmax.f32 %v165_v14, 0.0  ;;  %v218_v31 = vadd.f32 %v217_v16, %v214_v23  ;;  %v236_v32 = vmul.f32 %v235_v21, %v1192_v2  ;;  %s1366_s4 = sld [smem:[#allocation8 + $0xb]]  ;;  %s1373_s3 = sld [smem:[#allocation7 + $0x581]] }
  0x6f   :  { %v245_v33 = vmul.f32 %v244_v28, %v1180_v0  ;;  %v233_v34 = vadd.f32 %v232_v25, %v229_v27  ;;  %v239_v35 = vstv %s1287_s16  ;;  %v250_v36 = vstv %s1293_s17  ;;  %s1379_s5 = sld [smem:[#allocation7 + $0x582]]  ;;  %s1381_s10 = sld [smem:[#allocation7 + $0x583]] }
  0x70   :  { %v254_v37 = vstv %s1295_s18  ;;  %v203_v38 = vadd.f32 %v202_v18, %v199_v22  ;;  %v222_v39 = vadd.f32 %v221_v24, %v218_v31  ;;  %v251_v41 = vmul.f32 %v250_v36, %v1186_v1  ;;  %s1390_s11 = sld [smem:[#allocation10]]  ;;  %s1397_s13 = sld [smem:[#allocation10 + $0x1]] }
  0x71   :  { %v248_v40 = vadd.f32 %v247_v29, %v245_v33  ;;  %v1347_v42 = vmax.f32 %v184_v26, 0.0  ;;  %v258_v43 = vstv %s1300_s19  ;;  %v263_v44 = vstv %s1305_s20  ;;  %s1392_s12 = sld [smem:[#allocation11]]  ;;  %s1403_s14 = sld [smem:[#allocation10 + $0x2]] }
  0x72   :  { %v266_v45 = vstv %s1307_s21  ;;  %v240_v46 = vmul.f32 %v239_v35, %v1201_v7  ;;  %v255_v47 = vmul.f32 %v254_v37, %v1192_v2  ;;  %v264_v48 = vmul.f32 %v263_v44, %v1180_v0  ;;  %s1405_s15 = sld [smem:[#allocation10 + $0x3]]  ;;  %s1412_s16 = sld [smem:[#allocation10 + $0x4]] }
  0x73   :  { %v269_v49 = vstv %s1311_s1  ;;  %v237_v51 = vadd.f32 %v236_v32, %v233_v34  ;;  %v252_v52 = vadd.f32 %v251_v41, %v248_v40  ;;  %v273_v54 = vstv %s1317_s22  ;;  %s1414_s17 = sld [smem:[#allocation10 + $0x5]]  ;;  %s1418_s18 = sld [smem:[#allocation10 + $0x6]] }
  0x74   :  { %v270_v53 = vmul.f32 %v269_v49, %v1186_v1  ;;  %v1368_v55 = vmax.f32 %v203_v38, 0.0  ;;  %v1370_v56 = vmax.f32 %v222_v39, 0.0  ;;  %v259_v57 = vmul.f32 %v258_v43, %v1201_v7  ;;  %s1423_s19 = sld [smem:[#allocation10 + $0x7]]  ;;  %s1428_s20 = sld [smem:[#allocation10 + $0x8]] }
  0x75   :  { %v267_v59 = vadd.f32 %v266_v45, %v264_v48  ;;  %v277_v60 = vstv %s1321_s23  ;;  %v282_v61 = vstv %s1323_s24  ;;  %v285_v62 = vstv %s1327_s25  ;;  %s1432_s21 = sld [smem:[#allocation10 + $0x9]]  ;;  %s1434_s1 = sld [smem:[#allocation10 + $0x80]] }
  0x76   :  { %v288_v63 = vstv %s1329_s26  ;;  %v274_v4 = vmul.f32 %v273_v54, %v1192_v2  ;;  %v283_v5 = vmul.f32 %v282_v61, %v1180_v0  ;;  %v1386_v8 = vadd.f32 %v240_v46, %v237_v51  ;;  %s1439_s22 = sld [smem:[#allocation11 + $0x1]]  ;;  %s1446_s24 = sld [smem:[#allocation10 + $0x82]] }
  0x77   :  { %v271_v3 = vadd.f32 %v270_v53, %v267_v59  ;;  %v289_v6 = vmul.f32 %v288_v63, %v1186_v1  ;;  %v256_v9 = vadd.f32 %v255_v47, %v252_v52  ;;  %v292_v10 = vstv %s1338_s27  ;;  %s1441_s23 = sld [smem:[#allocation10 + $0x81]]  ;;  %s1448_s25 = sld [smem:[#allocation10 + $0x83]] }
  0x78   :  { %v301_v11 = vstv %s1340_s28  ;;  %v278_v12 = vmul.f32 %v277_v60, %v1201_v7  ;;  %v286_v13 = vadd.f32 %v285_v62, %v283_v5  ;;  %v293_v14 = vmul.f32 %v292_v10, %v1192_v2  ;;  %s1451_s26 = sld [smem:[#allocation10 + $0xa]]  ;;  %s1460_s27 = sld [smem:[#allocation10 + $0xb]] }
  0x79   :  { %v304_v15 = vstv %s1345_s30  ;;  %v296_v16 = vstv %s1343_s29  ;;  %v302_v17 = vmul.f32 %v301_v11, %v1180_v0  ;;  %v307_v18 = vstv %s1352_s8  ;;  %s1462_s28 = sld [smem:[#allocation10 + $0x84]]  ;;  %s1466_s29 = sld [smem:[#allocation10 + $0x85]] }
  0x7a   :  { %v311_v19 = vstv %s1354_s9  ;;  %v275_v20 = vadd.f32 %v274_v4, %v271_v3  ;;  %v290_v21 = vadd.f32 %v289_v6, %v286_v13  ;;  %v308_v22 = vmul.f32 %v307_v18, %v1186_v1  ;;  %s1468_s30 = sld [smem:[#allocation10 + $0x86]]  ;;  %s1483_s8 = sld [smem:[#allocation10 + $0x87]] }
  0x7b   :  { %v312_v23 = vmul.f32 %v311_v19, %v1192_v2  ;;  %v305_v24 = vadd.f32 %v304_v15, %v302_v17  ;;  %v315_v25 = vstv %s1360_s0  ;;  %v320_v26 = vstv %s1364_s2  ;;  %s1485_s9 = sld [smem:[#allocation10 + $0x100]]  ;;  %s1493_s2 = sld [smem:[#allocation11 + $0x2]] }
  0x7c   :  { %v323_v27 = vstv %s1366_s4  ;;  %v260_v28 = vadd.f32 %v259_v57, %v256_v9  ;;  %v294_v29 = vadd.f32 %v293_v14, %v290_v21  ;;  %v297_v31 = vmul.f32 %v296_v16, %v1201_v7  ;;  %s1491_s0 = sld [smem:[#allocation10 + $0x88]]  ;;  %s1499_s4 = sld [smem:[#allocation10 + $0x101]] }
  0x7d   :  { %v321_v32 = vmul.f32 %v320_v26, %v1180_v0  ;;  %v309_v33 = vadd.f32 %v308_v22, %v305_v24  ;;  %v326_v34 = vstv %s1373_s3  ;;  %v330_v35 = vstv %s1379_s5  ;;  %s1501_s3 = sld [smem:[#allocation10 + $0x102]]  ;;  %s1505_s5 = sld [smem:[#allocation10 + $0x89]] }
  0x7e   :  { %v334_v36 = vstv %s1381_s10  ;;  %v316_v37 = vmul.f32 %v315_v25, %v1201_v7  ;;  %v327_v39 = vmul.f32 %v326_v34, %v1186_v1  ;;  %v331_v40 = vmul.f32 %v330_v35, %v1192_v2  ;;  %s1511_s10 = sld [smem:[#allocation10 + $0x103]] }
  0x7f   :  { %v324_v38 = vadd.f32 %v323_v27, %v321_v32  ;;  %v279_v0 = vadd.f32 %v278_v12, %v275_v20  ;;  %v313_v41 = vadd.f32 %v312_v23, %v309_v33  ;;  %v339_v43 = vstv %s1390_s11  ;;  %s1515_s11 = sld [smem:[#allocation10 + $0x8a]] }
  0x80   :  { %v342_v44 = vstv %s1392_s12  ;;  %v335_v46 = vmul.f32 %v334_v36, %v1201_v7  ;;  %v340_v47 = vmul.f32 %v339_v43, %v1272_v50  ;;  %v345_v1 = vstv %s1397_s13  ;;  %s1517_s12 = sld [smem:[#allocation10 + $0x104]]  ;;  %s1521_s13 = sld [smem:[#allocation10 + $0x8b]] }
  0x81   :  { %v328_v45 = vadd.f32 %v327_v39, %v324_v38  ;;  %v298_v2 = vadd.f32 %v297_v31, %v294_v29  ;;  %v346_v48 = vmul.f32 %v345_v1, %v1284_v58  ;;  %v349_v49 = vstv %s1403_s14  ;;  %s1523_s14 = sld [smem:[#allocation10 + $0x105]] }
  0x82   :  { %v353_v51 = vstv %s1405_s15  ;;  %v317_v7 = vadd.f32 %v316_v37, %v313_v41  ;;  %v343_v53 = vadd.f32 %v342_v44, %v340_v47  ;;  %v350_v54 = vmul.f32 %v349_v49, %v1331_v30  ;;  %s1646_s15 = sld [smem:[#allocation10 + $0x207]] }
  0x83   :  { %v332_v52 = vadd.f32 %v331_v40, %v328_v45  ;;  %v1454_v57 = vmax.f32 %v1386_v8, 0.0  ;;  %v1456_v59 = vmax.f32 %v260_v28, 0.0  ;;  %v357_v60 = vstv %s1412_s16  ;;  %s1651_s16 = sld [smem:[#allocation10 + $0x208]] }
  0x84   :  { %v361_v61 = vstv %s1414_s17  ;;  %v347_v63 = vadd.f32 %v346_v48, %v343_v53  ;;  %v354_v3 = vmul.f32 %v353_v51, %v1347_v42  ;;  %v365_v4 = vstv %s1418_s18  ;;  %s1530_s17 = sld [smem:[#allocation10 + $0x106]]  ;;  %s1532_s18 = sld [smem:[#allocation10 + $0x107]] }
  0x85   :  { %v336_v62 = vadd.f32 %v335_v46, %v332_v52  ;;  %v1470_v5 = vmax.f32 %v279_v0, 0.0  ;;  %v1472_v6 = vmax.f32 %v298_v2, 0.0  ;;  %v369_v8 = vstv %s1423_s19  ;;  %s1546_s19 = sld [smem:[#allocation10 + $0x108]] }
  0x86   :  { %v1475_v9 = vmax.f32 %v317_v7, 0.0  ;;  %v351_v10 = vadd.f32 %v350_v54, %v347_v63  ;;  %v358_v11 = vmul.f32 %v357_v60, %v1368_v55  ;;  %v362_v12 = vmul.f32 %v361_v61, %v1370_v56 }
  0x87   :  { %v366_v13 = vmul.f32 %v365_v4, %v1454_v57  ;;  %v373_v14 = vstv %s1428_s20  ;;  %v377_v15 = vstv %s1432_s21  ;;  %v390_v16 = vstv %s1434_s1  ;;  %s1548_s20 = sld [smem:[#allocation10 + $0x180]]  ;;  %s1552_s21 = sld [smem:[#allocation10 + $0x109]] }
  0x88   :  { %v1487_v17 = vmax.f32 %v336_v62, 0.0  ;;  %v355_v18 = vadd.f32 %v354_v3, %v351_v10  ;;  %v370_v19 = vmul.f32 %v369_v8, %v1456_v59  ;;  %v391_v20 = vmul.f32 %v390_v16, %v1272_v50  ;;  %s1554_s1 = sld [smem:[#allocation11 + $0x3]] }
  0x89   :  { %v393_v21 = vstv %s1439_s22  ;;  %v396_v22 = vstv %s1441_s23  ;;  %v400_v23 = vstv %s1446_s24  ;;  %v404_v24 = vstv %s1448_s25  ;;  %s1559_s22 = sld [smem:[#allocation10 + $0x181]]  ;;  %s1561_s23 = sld [smem:[#allocation10 + $0x182]] }
  0x8a   :  { %v359_v25 = vadd.f32 %v358_v11, %v355_v18  ;;  %v394_v26 = vadd.f32 %v393_v21, %v391_v20  ;;  %v397_v27 = vmul.f32 %v396_v22, %v1284_v58  ;;  %v401_v28 = vmul.f32 %v400_v23, %v1331_v30  ;;  %s1565_s24 = sld [smem:[#allocation10 + $0x10a]]  ;;  %s1570_s25 = sld [smem:[#allocation10 + $0x183]] }
  0x8b   :  { %v381_v29 = vstv %s1451_s26  ;;  %v385_v31 = vstv %s1460_s27  ;;  %v405_v32 = vmul.f32 %v404_v24, %v1347_v42  ;;  %v408_v33 = vstv %s1462_s28  ;;  %s1572_s26 = sld [smem:[#allocation10 + $0x184]]  ;;  %s1577_s27 = sld [smem:[#allocation10 + $0x10b]] }
  0x8c   :  { %v363_v34 = vadd.f32 %v362_v12, %v359_v25  ;;  %v398_v35 = vadd.f32 %v397_v27, %v394_v26  ;;  %v412_v36 = vstv %s1466_s29  ;;  %v416_v37 = vstv %s1468_s30  ;;  %s1579_s28 = sld [smem:[#allocation10 + $0x185]]  ;;  %s1584_s29 = sld [smem:[#allocation10 + $0x186]] }
  0x8d   :  { %v374_v38 = vmul.f32 %v373_v14, %v1470_v5  ;;  %v378_v39 = vmul.f32 %v377_v15, %v1472_v6  ;;  %v750_v40 = vstv %s1907_s6  ;;  %v382_v41 = vmul.f32 %v381_v29, %v1475_v9  ;;  %s1586_s30 = sld [smem:[#allocation10 + $0x187]] }
  0x8e   :  { %v367_v0 = vadd.f32 %v366_v13, %v363_v34  ;;  %v402_v43 = vadd.f32 %v401_v28, %v398_v35  ;;  %v409_v44 = vmul.f32 %v408_v33, %v1368_v55  ;;  %v1535_v45 = vmul.f32 %v385_v31, %v1487_v17  ;;  %s971_s6 = sld [smem:[#allocation13 + $0x7]] }
  0x8f   :  { %v413_v46 = vmul.f32 %v412_v36, %v1370_v56  ;;  %v417_v47 = vmul.f32 %v416_v37, %v1454_v57  ;;  %v441_v1 = vstv %s1485_s9  ;;  %v420_v49 = vstv %s1483_s8  ;;  %s1598_s8 = sld [smem:[#allocation10 + $0x188]]  ;;  %s1600_s9 = sld [smem:[#allocation10 + $0x189]] }
  0x90   :  { %v371_v2 = vadd.f32 %v370_v19, %v367_v0  ;;  %v406_v48 = vadd.f32 %v405_v32, %v402_v43  ;;  %v424_v51 = vstv %s1491_s0  ;;  %v442_v7 = vmul.f32 %v441_v1, %v1272_v50  ;;  %s1605_s0 = sld [smem:[#allocation10 + $0x18a]] }
  0x91   :  { %v444_v52 = vstv %s1493_s2  ;;  %v447_v53 = vstv %s1499_s4  ;;  %v451_v54 = vstv %s1501_s3  ;;  %v428_v62 = vstv %s1505_s5  ;;  %s1607_s2 = sld [smem:[#allocation10 + $0x200]]  ;;  %s1612_s4 = sld [smem:[#allocation11 + $0x4]] }
  0x92   :  { %v375_v60 = vadd.f32 %v374_v38, %v371_v2  ;;  %v410_v61 = vadd.f32 %v409_v44, %v406_v48  ;;  %v448_v63 = vmul.f32 %v447_v53, %v1284_v58  ;;  %v421_v3 = vmul.f32 %v420_v49, %v1456_v59  ;;  %s1614_s3 = sld [smem:[#allocation10 + $0x201]]  ;;  %s1618_s5 = sld [smem:[#allocation10 + $0x202]] }
  0x93   :  { %v445_v4 = vadd.f32 %v444_v52, %v442_v7  ;;  %v452_v8 = vmul.f32 %v451_v54, %v1331_v30  ;;  %v455_v10 = vstv %s1511_s10  ;;  %v432_v13 = vstv %s1515_s11  ;;  %s1620_s10 = sld [smem:[#allocation10 + $0x203]] }
  0x94   :  { %v379_v11 = vadd.f32 %v378_v39, %v375_v60  ;;  %v414_v12 = vadd.f32 %v413_v46, %v410_v61  ;;  %v459_v14 = vstv %s1517_s12  ;;  %v436_v15 = vstv %s1521_s13  ;;  %s1628_s11 = sld [smem:[#allocation10 + $0x18b]]  ;;  %s1630_s12 = sld [smem:[#allocation10 + $0x204]] }
  0x95   :  { %v449_v16 = vadd.f32 %v448_v63, %v445_v4  ;;  %v456_v18 = vmul.f32 %v455_v10, %v1347_v42  ;;  %v463_v19 = vstv %s1523_s14  ;;  %v425_v21 = vmul.f32 %v424_v51, %v1470_v5  ;;  %s1637_s13 = sld [smem:[#allocation10 + $0x205]]  ;;  %s1641_s14 = sld [smem:[#allocation10 + $0x206]] }
  0x96   :  { %v418_v20 = vadd.f32 %v417_v47, %v414_v12  ;;  %v467_v22 = vstv %s1530_s17  ;;  %v471_v23 = vstv %s1532_s18  ;;  %v429_v24 = vmul.f32 %v428_v62, %v1472_v6  ;;  %s1656_s17 = sld [smem:[#allocation10 + $0x280]]  ;;  %s1661_s18 = sld [smem:[#allocation11 + $0x5]] }
  0x97   :  { %v433_v25 = vmul.f32 %v432_v13, %v1475_v9  ;;  %v453_v26 = vadd.f32 %v452_v8, %v449_v16  ;;  %v460_v27 = vmul.f32 %v459_v14, %v1368_v55  ;;  %v383_v28 = vadd.f32 %v382_v41, %v379_v11 }
  0x98   :  { %v422_v29 = vadd.f32 %v421_v3, %v418_v20  ;;  %v1589_v31 = vmul.f32 %v436_v15, %v1487_v17  ;;  %v464_v32 = vmul.f32 %v463_v19, %v1370_v56  ;;  %v468_v34 = vmul.f32 %v467_v22, %v1454_v57 }
  0x99   :  { %v457_v33 = vadd.f32 %v456_v18, %v453_v26  ;;  %v472_v35 = vmul.f32 %v471_v23, %v1456_v59  ;;  %v492_v36 = vstv %s1548_s20  ;;  %v475_v38 = vstv %s1546_s19  ;;  %s1663_s19 = sld [smem:[#allocation10 + $0x281]] }
  0x9a   :  { %v426_v37 = vadd.f32 %v425_v21, %v422_v29  ;;  %v479_v39 = vstv %s1552_s21  ;;  %v493_v0 = vmul.f32 %v492_v36, %v1272_v50  ;;  %v495_v43 = vstv %s1554_s1  ;;  %s1667_s20 = sld [smem:[#allocation10 + $0x209]]  ;;  %s1672_s21 = sld [smem:[#allocation10 + $0x282]] }
  0x9b   :  { %v461_v41 = vadd.f32 %v460_v27, %v457_v33  ;;  %v498_v44 = vstv %s1559_s22  ;;  %v502_v46 = vstv %s1561_s23  ;;  %v483_v47 = vstv %s1565_s24  ;;  %s1674_s1 = sld [smem:[#allocation10 + $0x283]]  ;;  %s1678_s22 = sld [smem:[#allocation10 + $0x20a]] }
  0x9c   :  { %v496_v1 = vadd.f32 %v495_v43, %v493_v0  ;;  %v499_v2 = vmul.f32 %v498_v44, %v1284_v58  ;;  %v503_v48 = vmul.f32 %v502_v46, %v1331_v30  ;;  %v430_v49 = vadd.f32 %v429_v24, %v426_v37  ;;  %s1686_s23 = sld [smem:[#allocation10 + $0x20b]]  ;;  %s1688_s24 = sld [smem:[#allocation10 + $0x284]] }
  0x9d   :  { %v465_v51 = vadd.f32 %v464_v32, %v461_v41  ;;  %v506_v7 = vstv %s1570_s25  ;;  %v510_v52 = vstv %s1572_s26  ;;  %v476_v53 = vmul.f32 %v475_v38, %v1470_v5  ;;  %s1692_s25 = sld [smem:[#allocation10 + $0x285]]  ;;  %s1694_s26 = sld [smem:[#allocation10 + $0x286]] }
  0x9e   :  { %v487_v54 = vstv %s1577_s27  ;;  %v500_v60 = vadd.f32 %v499_v2, %v496_v1  ;;  %v507_v61 = vmul.f32 %v506_v7, %v1347_v42  ;;  %v514_v63 = vstv %s1579_s28  ;;  %s1703_s27 = sld [smem:[#allocation10 + $0x287]]  ;;  %s1709_s28 = sld [smem:[#allocation10 + $0x288]] }
  0x9f   :  { %v469_v62 = vadd.f32 %v468_v34, %v465_v51  ;;  %v518_v3 = vstv %s1584_s29  ;;  %v522_v4 = vstv %s1586_s30  ;;  %v1633_v8 = vadd.f32 %v1535_v45, %v383_v28  ;;  %s1711_s29 = sld [smem:[#allocation10 + $0x289]]  ;;  %s1715_s30 = sld [smem:[#allocation10 + $0x300]] }
  0xa0   :  { %v480_v10 = vmul.f32 %v479_v39, %v1472_v6  ;;  %v504_v11 = vadd.f32 %v503_v48, %v500_v60  ;;  %v511_v12 = vmul.f32 %v510_v52, %v1368_v55  ;;  %v434_v13 = vadd.f32 %v433_v25, %v430_v49 }
  0xa1   :  { %v473_v14 = vadd.f32 %v472_v35, %v469_v62  ;;  %v484_v15 = vmul.f32 %v483_v47, %v1475_v9  ;;  %v488_v16 = vmul.f32 %v487_v54, %v1487_v17  ;;  %v515_v18 = vmul.f32 %v514_v63, %v1370_v56 }
  0xa2   :  { %v508_v45 = vadd.f32 %v507_v61, %v504_v11  ;;  %v519_v19 = vmul.f32 %v518_v3, %v1454_v57  ;;  %v523_v20 = vmul.f32 %v522_v4, %v1456_v59  ;;  %v526_v22 = vstv %s1598_s8  ;;  %s1717_s8 = sld [smem:[#allocation11 + $0x6]] }
  0xa3   :  { %v477_v21 = vadd.f32 %v476_v53, %v473_v14  ;;  %v530_v23 = vstv %s1600_s9  ;;  %v543_v24 = vstv %s1607_s2  ;;  %v534_v26 = vstv %s1605_s0  ;;  %s1723_s9 = sld [smem:[#allocation10 + $0x301]]  ;;  %s1725_s0 = sld [smem:[#allocation10 + $0x302]] }
  0xa4   :  { %v512_v25 = vadd.f32 %v511_v12, %v508_v45  ;;  %v544_v27 = vmul.f32 %v543_v24, %v1272_v50  ;;  %v546_v28 = vstv %s1612_s4  ;;  %v549_v32 = vstv %s1614_s3  ;;  %s1732_s2 = sld [smem:[#allocation10 + $0x28a]]  ;;  %s1734_s4 = sld [smem:[#allocation10 + $0x303]] }
  0xa5   :  { %v481_v29 = vadd.f32 %v480_v10, %v477_v21  ;;  %v553_v33 = vstv %s1618_s5  ;;  %v557_v34 = vstv %s1620_s10  ;;  %v550_v37 = vmul.f32 %v549_v32, %v1284_v58  ;;  %s1738_s3 = sld [smem:[#allocation10 + $0x28b]]  ;;  %s1744_s5 = sld [smem:[#allocation10 + $0x304]] }
  0xa6   :  { %v516_v35 = vadd.f32 %v515_v18, %v512_v25  ;;  %v547_v36 = vadd.f32 %v546_v28, %v544_v27  ;;  %v554_v38 = vmul.f32 %v553_v33, %v1331_v30  ;;  %v527_v0 = vmul.f32 %v526_v22, %v1470_v5  ;;  %s1746_s10 = sld [smem:[#allocation10 + $0x305]] }
  0xa7   :  { %v485_v39 = vadd.f32 %v484_v15, %v481_v29  ;;  %v538_v41 = vstv %s1628_s11  ;;  %v561_v43 = vstv %s1630_s12  ;;  %v558_v47 = vmul.f32 %v557_v34, %v1347_v42  ;;  %s1750_s11 = sld [smem:[#allocation10 + $0x306]]  ;;  %s1752_s12 = sld [smem:[#allocation10 + $0x307]] }
  0xa8   :  { %v520_v44 = vadd.f32 %v519_v19, %v516_v35  ;;  %v551_v46 = vadd.f32 %v550_v37, %v547_v36  ;;  %v565_v1 = vstv %s1637_s13  ;;  %v388_v2 = vmax.f32 %v1633_v8, 0.0  ;;  %s1765_s13 = sld [smem:[#allocation10 + $0x308]] }
  0xa9   :  { %v1682_v48 = vadd.f32 %v1589_v31, %v434_v13  ;;  %v531_v49 = vmul.f32 %v530_v23, %v1472_v6  ;;  %v569_v51 = vstv %s1641_s14  ;;  %v562_v53 = vmul.f32 %v561_v43, %v1368_v55  ;;  %s1767_s14 = sld [smem:[#allocation10 + $0x380]] }
  0xaa   :  { %v524_v7 = vadd.f32 %v523_v20, %v520_v44  ;;  %v555_v52 = vadd.f32 %v554_v38, %v551_v46  ;;  %v573_v54 = vstv %s1646_s15  ;;  %v535_v31 = vmul.f32 %v534_v26, %v1475_v9  ;;  %s1771_s15 = sld [smem:[#allocation11 + $0x7]] }
  0xab   :  { %v539_v60 = vmul.f32 %v538_v41, %v1487_v17  ;;  %v566_v61 = vmul.f32 %v565_v1, %v1370_v56  ;;  %v577_v62 = vstv %s1651_s16  ;;  %v1700_v63 = vadd.f32 %v488_v16, %v485_v39  ;;  %s1773_s16 = sld [smem:[#allocation10 + $0x381]] }
  0xac   :  { %v528_v3 = vadd.f32 %v527_v0, %v524_v7  ;;  %v559_v4 = vadd.f32 %v558_v47, %v555_v52  ;;  %v570_v10 = vmul.f32 %v569_v51, %v1454_v57  ;;  %v574_v11 = vmul.f32 %v573_v54, %v1456_v59 }
  0xad   :  { %v594_v12 = vstv %s1656_s17  ;;  %v597_v13 = vstv %s1661_s18  ;;  %v600_v14 = vstv %s1663_s19  ;;  %v578_v45 = vmul.f32 %v577_v62, %v1470_v5  ;;  %s1779_s17 = sld [smem:[#allocation10 + $0x382]]  ;;  %s1781_s18 = sld [smem:[#allocation10 + $0x383]] }
  0xae   :  { %v532_v15 = vadd.f32 %v531_v49, %v528_v3  ;;  %v563_v16 = vadd.f32 %v562_v53, %v559_v4  ;;  %v595_v18 = vmul.f32 %v594_v12, %v1272_v50  ;;  %v581_v19 = vstv %s1667_s20  ;;  %s1785_s19 = sld [smem:[#allocation10 + $0x309]]  ;;  %s1790_s20 = sld [smem:[#allocation10 + $0x30a]] }
  0xaf   :  { %v601_v20 = vmul.f32 %v600_v14, %v1284_v58  ;;  %v604_v21 = vstv %s1672_s21  ;;  %v608_v22 = vstv %s1674_s1  ;;  %v585_v24 = vstv %s1678_s22  ;;  %s1792_s21 = sld [smem:[#allocation10 + $0x384]]  ;;  %s1796_s1 = sld [smem:[#allocation10 + $0x30b]] }
  0xb0   :  { %v567_v23 = vadd.f32 %v566_v61, %v563_v16  ;;  %v598_v25 = vadd.f32 %v597_v13, %v595_v18  ;;  %v605_v26 = vmul.f32 %v604_v21, %v1331_v30  ;;  %v536_v27 = vadd.f32 %v535_v31, %v532_v15  ;;  %s1802_s22 = sld [smem:[#allocation10 + $0x385]] }
  0xb1   :  { %v589_v28 = vstv %s1686_s23  ;;  %v609_v29 = vmul.f32 %v608_v22, %v1347_v42  ;;  %v612_v32 = vstv %s1688_s24  ;;  %v616_v35 = vstv %s1692_s25  ;;  %s1806_s23 = sld [smem:[#allocation10 + $0x386]]  ;;  %s1813_s24 = sld [smem:[#allocation10 + $0x387]] }
  0xb2   :  { %v571_v33 = vadd.f32 %v570_v10, %v567_v23  ;;  %v602_v34 = vadd.f32 %v601_v20, %v598_v25  ;;  %v620_v36 = vstv %s1694_s26  ;;  %v439_v37 = vmax.f32 %v1682_v48, 0.0  ;;  %s1817_s25 = sld [smem:[#allocation10 + $0x388]] }
  0xb3   :  { %v490_v38 = vmax.f32 %v1700_v63, 0.0  ;;  %v582_v39 = vmul.f32 %v581_v19, %v1472_v6  ;;  %v586_v0 = vmul.f32 %v585_v24, %v1475_v9  ;;  %v590_v43 = vmul.f32 %v589_v28, %v1487_v17  ;;  %s1823_s26 = sld [smem:[#allocation13]] }
  0xb4   :  { %v575_v41 = vadd.f32 %v574_v11, %v571_v33  ;;  %v606_v44 = vadd.f32 %v605_v26, %v602_v34  ;;  %v613_v46 = vmul.f32 %v612_v32, %v1368_v55  ;;  %v1754_v47 = vadd.f32 %v539_v60, %v536_v27 }
  0xb5   :  { %v617_v1 = vmul.f32 %v616_v35, %v1370_v56  ;;  %v621_v49 = vmul.f32 %v620_v36, %v1454_v57  ;;  %v624_v51 = vstv %s1703_s27  ;;  %v628_v53 = vstv %s1709_s28  ;;  %s1825_s27 = sld [smem:[#allocation13 + $0x1]] }
  0xb6   :  { %v579_v7 = vadd.f32 %v578_v45, %v575_v41  ;;  %v610_v52 = vadd.f32 %v609_v29, %v606_v44  ;;  %v632_v54 = vstv %s1711_s29  ;;  %v645_v31 = vstv %s1715_s30  ;;  %s1828_s28 = sld [smem:[#allocation10 + $0x389]]  ;;  %s1834_s29 = sld [smem:[#allocation13 + $0x2]] }
  0xb7   :  { %v648_v61 = vstv %s1717_s8  ;;  %v651_v62 = vstv %s1723_s9  ;;  %v655_v3 = vstv %s1725_s0  ;;  %v646_v10 = vmul.f32 %v645_v31, %v1272_v50  ;;  %s1836_s30 = sld [smem:[#allocation13 + $0x3]]  ;;  %s1843_s8 = sld [smem:[#allocation10 + $0x38a]] }
  0xb8   :  { %v583_v60 = vadd.f32 %v582_v39, %v579_v7  ;;  %v614_v4 = vadd.f32 %v613_v46, %v610_v52  ;;  %v652_v11 = vmul.f32 %v651_v62, %v1284_v58  ;;  %v625_v12 = vmul.f32 %v624_v51, %v1456_v59  ;;  %s1845_s9 = sld [smem:[#allocation13 + $0x4]]  ;;  %s1853_s0 = sld [smem:[#allocation13 + $0x5]] }
  0xb9   :  { %v629_v13 = vmul.f32 %v628_v53, %v1470_v5  ;;  %v636_v14 = vstv %s1732_s2  ;;  %v659_v15 = vstv %s1734_s4  ;;  %v640_v45 = vstv %s1738_s3  ;;  %s1858_s2 = sld [smem:[#allocation10 + $0x38b]]  ;;  %s1870_s4 = sld [smem:[#allocation13 + $0x6]] }
  0xba   :  { %v618_v16 = vadd.f32 %v617_v1, %v614_v4  ;;  %v649_v18 = vadd.f32 %v648_v61, %v646_v10  ;;  %v656_v19 = vmul.f32 %v655_v3, %v1331_v30  ;;  %v587_v20 = vadd.f32 %v586_v0, %v583_v60 }
  0xbb   :  { %v660_v21 = vmul.f32 %v659_v15, %v1347_v42  ;;  %v663_v22 = vstv %s1744_s5  ;;  %v667_v23 = vstv %s1746_s10  ;;  %v671_v26 = vstv %s1750_s11  ;;  %s1108_s10 = smov [#allocation14]  }
  0xbc   :  { %v622_v24 = vadd.f32 %v621_v49, %v618_v16  ;;  %v653_v25 = vadd.f32 %v652_v11, %v649_v18  ;;  %v675_v27 = vstv %s1752_s12  ;;  %v541_v28 = vmax.f32 %v1754_v47, 0.0  ;;  %s793_s11 = sshll.u32 %s1108_s10, 4  ;;  %s794_s11 = int_to_ptr.vmem [resolvable:$true] %s793_s11 }
  0xbd   :  { %v633_v29 = vmul.f32 %v632_v54, %v1472_v6  ;;  %v637_v32 = vmul.f32 %v636_v14, %v1475_v9  ;;  %v641_v33 = vmul.f32 %v640_v45, %v1487_v17  ;;  %v664_v36 = vmul.f32 %v663_v22, %v1368_v55  ;;  %s1068_s12 = scalar_lea.vmem %s794_s11, 128  ;;  %p1073_p6 = scmp.lt.s32.totalorder %s794_s11, %s794_s11 }
  0xbe   :  { %v626_v34 = vadd.f32 %v625_v12, %v622_v24  ;;  %v657_v35 = vadd.f32 %v656_v19, %v653_v25  ;;  %v668_v39 = vmul.f32 %v667_v23, %v1370_v56  ;;  %v1808_v0 = vadd.f32 %v590_v43, %v587_v20  ;;  %p1069_p5 = scmp.ne.s32.totalorder %s794_s11, %s1068_s12  ;;  %p1074_p7 = scmp.lt.s32.totalorder %s1068_s12, %s1068_s12 }
  0xbf   :  { %v672_v41 = vmul.f32 %v671_v26, %v1454_v57  ;;  %v676_v44 = vmul.f32 %v675_v27, %v1456_v59  ;;  %v696_v46 = vstv %s1767_s14  ;;  %v679_v51 = vstv %s1765_s13 }
  0xc0   :  { %v630_v1 = vadd.f32 %v629_v13, %v626_v34  ;;  %v661_v49 = vadd.f32 %v660_v21, %v657_v35  ;;  %v697_v7 = vmul.f32 %v696_v46, %v1272_v50  ;;  %v699_v52 = vstv %s1771_s15  ;;  %p1075_p8 = por %p1074_p7, %p1073_p6 }
  0xc1   :  { %v702_v43 = vstv %s1773_s16  ;;  %v706_v53 = vstv %s1779_s17  ;;  %v710_v54 = vstv %s1781_s18  ;;  %v683_v50 = vstv %s1785_s19 }
  0xc2   :  { %v634_v31 = vadd.f32 %v633_v29, %v630_v1  ;;  %v665_v61 = vadd.f32 %v664_v36, %v661_v49  ;;  %v700_v62 = vadd.f32 %v699_v52, %v697_v7  ;;  %v703_v3 = vmul.f32 %v702_v43, %v1284_v58  ;;  %p1076_p9 = pnand %p1075_p8, %p1069_p5 }
  0xc3   :  { %v687_v60 = vstv %s1790_s20  ;;  %v707_v4 = vmul.f32 %v706_v53, %v1331_v30  ;;  %v714_v10 = vstv %s1792_s21  ;;  %v691_v12 = vstv %s1796_s1 }
  0xc4   :  { %v669_v11 = vadd.f32 %v668_v39, %v665_v61  ;;  %v704_v13 = vadd.f32 %v703_v3, %v700_v62  ;;  %v711_v14 = vmul.f32 %v710_v54, %v1347_v42  ;;  %v592_v58 = vmax.f32 %v1808_v0, 0.0 }
  0xc5   :  { %v638_v15 = vadd.f32 %v637_v32, %v634_v31  ;;  %v680_v16 = vmul.f32 %v679_v51, %v1470_v5  ;;  %v718_v45 = vstv %s1802_s22  ;;  %v715_v19 = vmul.f32 %v714_v10, %v1368_v55 }
  0xc6   :  { %v673_v30 = vadd.f32 %v672_v41, %v669_v11  ;;  %v708_v18 = vadd.f32 %v707_v4, %v704_v13  ;;  %v722_v20 = vstv %s1806_s23  ;;  %v684_v42 = vmul.f32 %v683_v50, %v1472_v6 }
  0xc7   :  { %v688_v21 = vmul.f32 %v687_v60, %v1475_v9  ;;  %v692_v22 = vmul.f32 %v691_v12, %v1487_v17  ;;  %v726_v23 = vstv %s1813_s24  ;;  %v719_v26 = vmul.f32 %v718_v45, %v1370_v56 }
  0xc8   :  { %v677_v24 = vadd.f32 %v676_v44, %v673_v30  ;;  %v712_v25 = vadd.f32 %v711_v14, %v708_v18  ;;  %v730_v27 = vstv %s1817_s25  ;;  %v642_v29 = vadd.f32 %v641_v33, %v638_v15 }
  0xc9   :  { %v723_v55 = vmul.f32 %v722_v20, %v1454_v57  ;;  %v747_v32 = vstv %s1823_s26  ;;  %v753_v34 = vstv %s1825_s27  ;;  %v727_v39 = vmul.f32 %v726_v23, %v1456_v59 }
  0xca   :  { %v681_v35 = vadd.f32 %v680_v16, %v677_v24  ;;  %v716_v36 = vadd.f32 %v715_v19, %v712_v25  ;;  %v748_v0 = vmul.f32 %v747_v32, %v388_v2  ;;  %v734_v41 = vstv %s1828_s28 }
  0xcb   :  { %v754_v56 = vmul.f32 %v753_v34, %v439_v37  ;;  %v757_v33 = vstv %s1834_s29  ;;  %v761_v57 = vstv %s1836_s30  ;;  %v643_v8 = vmax.f32 %v642_v29, 0.0 }
  0xcc   :  { %v685_v44 = vadd.f32 %v684_v42, %v681_v35  ;;  %v720_v46 = vadd.f32 %v719_v26, %v716_v36  ;;  %v751_v1 = vadd.f32 %v750_v40, %v748_v0  ;;  %v758_v59 = vmul.f32 %v757_v33, %v490_v38 }
  0xcd   :  { %v731_v2 = vmul.f32 %v730_v27, %v1470_v5  ;;  %v738_v48 = vstv %s1843_s8  ;;  %v765_v37 = vstv %s1845_s9  ;;  %v762_v52 = vmul.f32 %v761_v57, %v541_v28 }
  0xce   :  { %v689_v49 = vadd.f32 %v688_v21, %v685_v44  ;;  %v724_v51 = vadd.f32 %v723_v55, %v720_v46  ;;  %v755_v7 = vadd.f32 %v754_v56, %v751_v1  ;;  %v735_v43 = vmul.f32 %v734_v41, %v1472_v6 }
  0xcf   :  { %v769_v53 = vstv %s1853_s0  ;;  %v766_v38 = vmul.f32 %v765_v37, %v592_v58  ;;  %v739_v31 = vmul.f32 %v738_v48, %v1475_v9  ;;  %v742_v61 = vstv %s1858_s2 }
  0xd0   :  { %v693_v40 = vadd.f32 %v692_v22, %v689_v49  ;;  %v728_v54 = vadd.f32 %v727_v39, %v724_v51  ;;  %v759_v63 = vadd.f32 %v758_v59, %v755_v7  ;;  %v770_v50 = vmul.f32 %v769_v53, %v643_v8 }
  0xd1   :  { %v773_v60 = vstv %s1870_s4  ;;  %v743_v47 = vmul.f32 %v742_v61, %v1487_v17  ;;  %v777_v13 = vstv %s971_s6 }
  0xd2   :  { %v694_v5 = vmax.f32 %v693_v40, 0.0  ;;  %v732_v62 = vadd.f32 %v731_v2, %v728_v54  ;;  %v763_v3 = vadd.f32 %v762_v52, %v759_v63 }
  0xd4   :  { %v736_v4 = vadd.f32 %v735_v43, %v732_v62  ;;  %v767_v28 = vadd.f32 %v766_v38, %v763_v3  ;;  %v774_v11 = vmul.f32 %v773_v60, %v694_v5 }
  0xd6   :  { %v740_v10 = vadd.f32 %v739_v31, %v736_v4  ;;  %v771_v6 = vadd.f32 %v770_v50, %v767_v28 }
  0xd8   :  { %v744_v12 = vadd.f32 %v743_v47, %v740_v10  ;;  %v775_v58 = vadd.f32 %v774_v11, %v771_v6 }
  0xda   :  { %v745_v14 = vmax.f32 %v744_v12, 0.0 }
  0xdc   :  { %v778_v15 = vmul.f32 %v777_v13, %v745_v14 }
  0xde   :  { %v779_v9 = vadd.f32 %v778_v15, %v775_v58 }
  0xe0   :  { %v972_v16 = vmul.f32 -1.442695, %v779_v9 }
  0xe2   :  { %982 = vpow2.f32 %v972_v16 }
  0xec   :  { %v983_v45 = vpop.eup %982 }
  0xed   :  { %v783_v30 = vadd.f32 1.0, %v983_v45 }
  0xef   :  { %984 = vrcp.f32 %v783_v30 }
  0xf9   :  { %v985_v18 = vpop.eup %984 }
  0xfa   :  { %786 = vst [vmem:[#allocation14] sm:$0xff] %v985_v18 }
  0xfb   :  { %1079 = shalt.err (!%p1076_p9)
}
  0xfc   :  { %s1080_s15 = scalar_lea.hbm %s1908_s7, 128 }
  0xfd   :  { %p1081_p10 = scmp.ne.s32.totalorder %s1908_s7, %s1080_s15  ;;  %p1084_p11 = scmp.lt.u32.totalorder %s1080_s15, %s1908_s7 }
  0xff   :  { %p1086_p12 = pnand %p1084_p11, %p1081_p10 }
 0x101   :  { %1089 = shalt.err (!%p1086_p12)
}
 0x102   :  { %796 = dma.vmem_to_hbm [thread:$0]  %s794_s11, 128, %s1908_s7, [#allocation5]  }
 0x103   :  { %1098 = dma.done.wait [#allocation5], 128  }
 0x104   :  { %1099 = vsyncadd [#allocation5], 4294967168 }
 0x105   :  { %800 = vsyncpa [#allocation4], 1 }
 0x106   :  { %801 = vsyncpa [#allocation5], 1 }
 0x107   :  { %802 = vsyncpa [#allocation6], 1 }
 0x108   :  { %803 = vsyncpa [#allocation9], 1 }
 0x109   :  { %804 = vsyncpa [#allocation12], 1 }

</bundles_post_ra>
